<compile_context>
chip_gen: v5e
topology: v5e:2x2
jax: 0.10.0
libtpu: 0.0.40
codegen_flags: <defaults>
</compile_context>

<pallas_src>
import math
from functools import partial
from typing import NamedTuple

import jax
import jax.numpy as jnp
from jax.experimental import pallas as pl
from jax.experimental.pallas import tpu as pltpu

LANE = 128
ROW_ALIGN = 16          # bf16 sublane packing -> keep row tiles multiples of 16
MAX_ROW_TILE = 512
BN_EPS = 1e-3
VMEM_LIMIT = 48 * 1024 * 1024   # stays under v7x's 64 MiB physical VMEM

VMEM_SPEC = pl.BlockSpec(memory_space=pltpu.MemorySpace.VMEM)


# ----------------------------------------------------------------------------
# small helpers
# ----------------------------------------------------------------------------
def _round_up(n, m):
    return -(-n // m) * m


def _cparams(sem):
    return pltpu.CompilerParams(dimension_semantics=sem,
                                vmem_limit_bytes=VMEM_LIMIT)


class Slab(NamedTuple):
    """Channel-padded, row-padded activation slab: data is (B, HWp, Cp) bf16."""
    data: jax.Array
    batch: int
    H: int
    W: int
    C: int          # logical channels
    tile: int       # row tile (divides HWp)


def _row_tile(hw):
    return min(MAX_ROW_TILE, _round_up(hw, ROW_ALIGN))


def make_slab(x_nhwc, logical_c=None):
    """(B, H, W, Cany) -> Slab.  Channel padding is zero; row padding is zero."""
    B, H, W, cin = x_nhwc.shape
    C = cin if logical_c is None else logical_c
    cp = _round_up(cin, LANE)
    hw = H * W
    t = _row_tile(hw)
    hwp = _round_up(hw, t)
    xf = x_nhwc.reshape(B, hw, cin)
    xf = jnp.pad(xf, ((0, 0), (0, hwp - hw), (0, cp - cin)))
    return Slab(xf.astype(jnp.bfloat16), B, H, W, C, t)


# ----------------------------------------------------------------------------
# Pallas kernels
# ----------------------------------------------------------------------------
def _mm_kernel(*refs, act, has_gate, has_res):
    # y = act((gate * x) @ w * scale + bias) [+ residual]
    x_ref, w_ref, s_ref, b_ref = refs[0], refs[1], refs[2], refs[3]
    o_ref = refs[-1]
    i = 4
    gate_ref = None
    res_ref = None
    if has_gate:
        gate_ref = refs[i]
        i += 1
    if has_res:
        res_ref = refs[i]
        i += 1

    x = x_ref[...]                                      # (T, Kp) bf16
    if gate_ref is not None:                            # SE per-(batch,channel) gate
        x = (x.astype(jnp.float32) * gate_ref[...]).astype(jnp.bfloat16)
    y = jnp.dot(x, w_ref[...], preferred_element_type=jnp.float32)
    y = y * s_ref[...] + b_ref[...]                     # folded BN (f32 epilogue)
    if act == "silu":
        y = y * jax.nn.sigmoid(y)
    if res_ref is not None:                             # fused shortcut add
        y = y + res_ref[...].astype(jnp.float32)
    o_ref[...] = y.astype(o_ref.dtype)


def _dw_kernel(x_ref, w_ref, s_ref, b_ref, o_ref, *, k, Ho, Wo):
    # depthwise conv: k*k taps generated in-kernel from the padded VMEM block,
    # unrolled tap loop (LLO-visible), then fused BN + SiLU.
    w = w_ref[...]                                      # (k*k, 1, Cp) f32
    acc = None
    for dy in range(k):
        for dx in range(k):
            t = x_ref[dy:dy + Ho, dx:dx + Wo, :].astype(jnp.float32)
            wt = w[dy * k + dx: dy * k + dx + 1]        # (1, 1, Cp)
            term = t * wt
            acc = term if acc is None else acc + term
    y = acc * s_ref[...] + b_ref[...]
    y = y * jax.nn.sigmoid(y)
    o_ref[...] = y.astype(o_ref.dtype)


def _pool_kernel(x_ref, o_ref, *, hw, tile):
    # masked global-average pool: grid reduction over row tiles into (1, Cp).
    i = pl.program_id(1)

    @pl.when(i == 0)
    def _():
        o_ref[...] = jnp.zeros_like(o_ref)

    x = x_ref[...].astype(jnp.float32)                  # (T, Cp)
    rows = jax.lax.broadcasted_iota(jnp.int32, x.shape, 0) + i * tile
    x = jnp.where(rows < hw, x, 0.0)
    o_ref[...] += jnp.sum(x, axis=0, keepdims=True)

    @pl.when(i == pl.num_programs(1) - 1)
    def _():
        o_ref[...] = o_ref[...] * (1.0 / hw)


def _se_fc_kernel(p_ref, w1_ref, b1_ref, w2_ref, b2_ref, o_ref):
    # squeeze-excitation FCs on the pooled (B, Cp) tensor (tiny; f32).
    p = p_ref[...]
    h = jnp.dot(p, w1_ref[...], preferred_element_type=jnp.float32) + b1_ref[...]
    h = h * jax.nn.sigmoid(h)                           # SiLU
    g = jnp.dot(h, w2_ref[...], preferred_element_type=jnp.float32) + b2_ref[...]
    o_ref[...] = jax.nn.sigmoid(g)


# ----------------------------------------------------------------------------
# kernel wrappers
# ----------------------------------------------------------------------------
def mm(s: Slab, w, scale, bias, act, new_c, gate=None, res: Slab = None,
       out_dtype=jnp.bfloat16):
    """Row-tiled 1x1 conv / matmul with fused BN + act (+ SE gate, + residual)."""
    B = s.batch
    hwp, Kp = s.data.shape[1], s.data.shape[2]
    Mp = w.shape[1]
    t = s.tile
    n = hwp // t
    assert w.shape[0] == Kp

    inputs = [s.data, w, scale, bias]
    in_specs = [
        pl.BlockSpec((None, t, Kp), lambda b, i: (b, i, 0)),
        pl.BlockSpec((Kp, Mp), lambda b, i: (0, 0)),
        pl.BlockSpec((1, Mp), lambda b, i: (0, 0)),
        pl.BlockSpec((1, Mp), lambda b, i: (0, 0)),
    ]
    has_gate = gate is not None
    has_res = res is not None
    if has_gate:
        assert gate.shape == (B, Kp)
        inputs.append(gate[:, None, :])                 # (B, 1, Kp) f32
        in_specs.append(pl.BlockSpec((None, 1, Kp), lambda b, i: (b, 0, 0)))
    if has_res:
        assert res.data.shape == (B, hwp, Mp) and res.tile == t
        inputs.append(res.data)
        in_specs.append(pl.BlockSpec((None, t, Mp), lambda b, i: (b, i, 0)))

    out = pl.pallas_call(
        partial(_mm_kernel, act=act, has_gate=has_gate, has_res=has_res),
        grid=(B, n),
        out_shape=jax.ShapeDtypeStruct((B, hwp, Mp), out_dtype),
        in_specs=in_specs,
        out_specs=pl.BlockSpec((None, t, Mp), lambda b, i: (b, i, 0)),
        compiler_params=_cparams(("parallel", "parallel")),
    )(*inputs)
    return Slab(out, B, s.H, s.W, new_c, t)


def dwconv(s: Slab, w, scale, bias, k, stride):
    """Depthwise kxk conv + BN + SiLU; taps generated in-kernel."""
    B, H, W, C = s.batch, s.H, s.W, s.C
    Cp = s.data.shape[2]
    p = (k - 1) // 2
    x = s.data[:, :H * W, :].reshape(B, H, W, Cp)
    xp = jnp.pad(x, ((0, 0), (p, p), (p, p), (0, 0)))
    Hin, Win = H + 2 * p, W + 2 * p

    out = pl.pallas_call(
        partial(_dw_kernel, k=k, Ho=H, Wo=W),
        grid=(B,),
        out_shape=jax.ShapeDtypeStruct((B, H, W, Cp), jnp.bfloat16),
        in_specs=[
            pl.BlockSpec((None, Hin, Win, Cp), lambda b: (b, 0, 0, 0)),
            pl.BlockSpec((k * k, 1, Cp), lambda b: (0, 0, 0)),
            pl.BlockSpec((1, 1, Cp), lambda b: (0, 0, 0)),
            pl.BlockSpec((1, 1, Cp), lambda b: (0, 0, 0)),
        ],
        out_specs=pl.BlockSpec((None, H, W, Cp), lambda b: (b, 0, 0, 0)),
        compiler_params=_cparams(("parallel",)),
    )(xp, w, scale, bias)

    if stride > 1:
        out = out[:, ::stride, ::stride, :]             # stride-2 subsample
    return make_slab(out, logical_c=C)


def global_pool(s: Slab):
    """Masked global-average pool -> (B, Cp) f32."""
    B = s.batch
    hwp, Cp = s.data.shape[1], s.data.shape[2]
    hw = s.H * s.W
    t = s.tile
    n = hwp // t
    out = pl.pallas_call(
        partial(_pool_kernel, hw=hw, tile=t),
        grid=(B, n),
        out_shape=jax.ShapeDtypeStruct((B, 1, Cp), jnp.float32),
        in_specs=[pl.BlockSpec((None, t, Cp), lambda b, i: (b, i, 0))],
        out_specs=pl.BlockSpec((None, 1, Cp), lambda b, i: (b, 0, 0)),
        compiler_params=_cparams(("parallel", "arbitrary")),
    )(s.data)
    return out[:, 0, :]


def se_gate(pooled, w1, b1, w2, b2):
    """Pooled (B, Cexp_p) -> per-(batch,channel) sigmoid gate (B, Cexp_p)."""
    B, Cp = pooled.shape
    return pl.pallas_call(
        _se_fc_kernel,
        out_shape=jax.ShapeDtypeStruct((B, Cp), jnp.float32),
        in_specs=[VMEM_SPEC] * 5,
        out_specs=VMEM_SPEC,
    )(pooled, w1, b1, w2, b2)


def stem_conv(x_nhwc, w, scale, bias, out_c):
    """3x3 stride-2 dense stem conv via small im2col (only 27 input lanes) +
    the standard row-tiled fused matmul kernel."""
    B, H, W, C = x_nhwc.shape
    k, stride, p = 3, 2, 1
    xp = jnp.pad(x_nhwc, ((0, 0), (p, p), (p, p), (0, 0)))
    Ho = (H + 2 * p - k) // stride + 1
    Wo = (W + 2 * p - k) // stride + 1
    taps = []
    for dy in range(k):
        for dx in range(k):
            taps.append(xp[:, dy:dy + (Ho - 1) * stride + 1:stride,
                              dx:dx + (Wo - 1) * stride + 1:stride, :])
    pat = jnp.concatenate(taps, axis=-1)                # (B, Ho, Wo, 27)
    slab = make_slab(pat)
    return mm(slab, w, scale, bias, "silu", new_c=out_c)


# ----------------------------------------------------------------------------
# EfficientNet config + deterministic parameter init (folded BN, padded, bf16)
# ----------------------------------------------------------------------------
def _make_divisible(channel, divisor=8, min_channel=None):
    if min_channel is None:
        min_channel = divisor
    new_channel = max(min_channel, int(channel + divisor / 2) // divisor * divisor)
    if new_channel < 0.9 * channel:
        new_channel += divisor
    return new_channel


def _adjust_channels(channel, width_coefficient):
    return _make_divisible(channel * width_coefficient)


def build_configs(width_coefficient, depth_coefficient):
    default_cnf = [
        [3, 32, 16, 1, 1, True, 1],
        [3, 16, 24, 6, 2, True, 2],
        [5, 24, 40, 6, 2, True, 2],
        [3, 40, 80, 6, 2, True, 3],
        [5, 80, 112, 6, 1, True, 3],
        [5, 112, 192, 6, 2, True, 4],
        [3, 192, 320, 6, 1, True, 1],
    ]

    def round_repeats(r):
        return int(math.ceil(depth_coefficient * r))

    cfgs = []
    for args in default_cnf:
        kernel, in_c0, out_c0, ratio, stride0, use_se, repeats = args
        for i in range(round_repeats(repeats)):
            stride = 1 if i > 0 else stride0
            in_c = out_c0 if i > 0 else in_c0
            inp = _adjust_channels(in_c, width_coefficient)
            out = _adjust_channels(out_c0, width_coefficient)
            cfgs.append(dict(kernel=kernel, input_c=inp, out_c=out,
                             expanded_c=inp * ratio, stride=stride,
                             use_se=use_se))
    return cfgs


class KeyGen:
    def __init__(self, seed):
        self.key = jax.random.PRNGKey(seed)

    def __call__(self):
        self.key, sub = jax.random.split(self.key)
        return sub


def _kaiming(kg, shape, fan_out):
    return jax.random.normal(kg(), shape, jnp.float32) * math.sqrt(2.0 / fan_out)


def _bn_fold(c):
    gamma = jnp.ones((c,), jnp.float32)
    beta = jnp.zeros((c,), jnp.float32)
    mean = jnp.zeros((c,), jnp.float32)
    var = jnp.ones((c,), jnp.float32)
    scale = gamma / jnp.sqrt(var + BN_EPS)
    bias = beta - mean * scale
    return scale, bias


def _pad_mat(w, dtype=jnp.bfloat16):
    r, c = w.shape
    return jnp.pad(w, ((0, _round_up(r, LANE) - r),
                       (0, _round_up(c, LANE) - c))).astype(dtype)


def _pad_vec(v, shape3=False):
    c = v.shape[0]
    cp = _round_up(c, LANE)
    vp = jnp.pad(v, (0, cp - c)).astype(jnp.float32)
    return vp.reshape(1, 1, cp) if shape3 else vp.reshape(1, cp)


def init_params(width_coefficient=1.0, depth_coefficient=1.0, num_classes=1000,
                seed=1234):
    kg = KeyGen(seed)
    cfgs = build_configs(width_coefficient, depth_coefficient)
    params = {"num_classes": num_classes}

    stem_out = _adjust_channels(32, width_coefficient)
    s, b = _bn_fold(stem_out)
    params["stem"] = dict(
        w=_pad_mat(_kaiming(kg, (27, stem_out), fan_out=stem_out * 9)),
        scale=_pad_vec(s), bias=_pad_vec(b), out_c=stem_out)

    blocks = []
    for cnf in cfgs:
        cin, cexp, cout, k = cnf["input_c"], cnf["expanded_c"], cnf["out_c"], cnf["kernel"]
        cexp_p = _round_up(cexp, LANE)
        p = dict(cnf=cnf)
        if cexp != cin:
            s_, b_ = _bn_fold(cexp)
            p["expand_w"] = _pad_mat(_kaiming(kg, (cin, cexp), fan_out=cexp))
            p["expand_scale"], p["expand_bias"] = _pad_vec(s_), _pad_vec(b_)
        dw = _kaiming(kg, (k * k, cexp), fan_out=k * k)
        p["dw_w"] = jnp.pad(dw, ((0, 0), (0, cexp_p - cexp))) \
            .reshape(k * k, 1, cexp_p).astype(jnp.float32)
        s_, b_ = _bn_fold(cexp)
        p["dw_scale"], p["dw_bias"] = _pad_vec(s_, True), _pad_vec(b_, True)
        if cnf["use_se"]:
            sq = cin // 4
            p["se_w1"] = _pad_mat(_kaiming(kg, (cexp, sq), fan_out=sq), jnp.float32)
            p["se_b1"] = _pad_vec(jnp.zeros((sq,), jnp.float32))
            p["se_w2"] = _pad_mat(_kaiming(kg, (sq, cexp), fan_out=cexp), jnp.float32)
            p["se_b2"] = _pad_vec(jnp.zeros((cexp,), jnp.float32))
        s_, b_ = _bn_fold(cout)
        p["proj_w"] = _pad_mat(_kaiming(kg, (cexp, cout), fan_out=cout))
        p["proj_scale"], p["proj_bias"] = _pad_vec(s_), _pad_vec(b_)
        blocks.append(p)
    params["blocks"] = blocks

    top_in = cfgs[-1]["out_c"]
    top_out = _adjust_channels(1280, width_coefficient)
    s, b = _bn_fold(top_out)
    params["top"] = dict(w=_pad_mat(_kaiming(kg, (top_in, top_out), fan_out=top_out)),
                         scale=_pad_vec(s), bias=_pad_vec(b), out_c=top_out)

    fcw = jax.random.normal(kg(), (top_out, num_classes), jnp.float32) * 0.01
    params["fc_w"] = _pad_mat(fcw)
    params["fc_b"] = _pad_vec(jnp.zeros((num_classes,), jnp.float32))
    params["fc_scale"] = _pad_vec(jnp.ones((num_classes,), jnp.float32))
    return params


# ----------------------------------------------------------------------------
# forward pass
# ----------------------------------------------------------------------------
def efficientnet_forward(params, x_nchw):
    x = jnp.transpose(x_nchw, (0, 2, 3, 1)).astype(jnp.float32)  # NCHW -> NHWC

    st = params["stem"]
    s = stem_conv(x, st["w"], st["scale"], st["bias"], st["out_c"])

    for p in params["blocks"]:
        cnf = p["cnf"]
        inp = s
        h = s
        if "expand_w" in p:                       # 1x1 expand conv + BN + SiLU
            h = mm(h, p["expand_w"], p["expand_scale"], p["expand_bias"],
                   "silu", new_c=cnf["expanded_c"])
        h = dwconv(h, p["dw_w"], p["dw_scale"], p["dw_bias"],
                   cnf["kernel"], cnf["stride"])
        gate = None
        if cnf["use_se"]:
            pooled = global_pool(h)
            gate = se_gate(pooled, p["se_w1"], p["se_b1"], p["se_w2"], p["se_b2"])
        use_res = cnf["stride"] == 1 and cnf["input_c"] == cnf["out_c"]
        # SE gate + folded BN + residual shortcut fused into the projection matmul.
        # (DropPath is identity in eval mode.)
        h = mm(h, p["proj_w"], p["proj_scale"], p["proj_bias"], "none",
               new_c=cnf["out_c"], gate=gate, res=inp if use_res else None)
        s = h

    tp = params["top"]
    s = mm(s, tp["w"], tp["scale"], tp["bias"], "silu", new_c=tp["out_c"])

    pooled = global_pool(s)                       # (B, 1280) f32  (avgpool+flatten)
    # Dropout is identity in eval mode.
    B = pooled.shape[0]
    Bp = _round_up(B, ROW_ALIGN)
    fc_in = jnp.pad(pooled, ((0, Bp - B), (0, 0))).astype(jnp.bfloat16)[None]
    fc_slab = Slab(fc_in, 1, Bp, 1, pooled.shape[1], Bp)
    logits = mm(fc_slab, params["fc_w"], params["fc_scale"], params["fc_b"],
                "none", new_c=params["num_classes"], out_dtype=jnp.float32)
    return logits.data[0, :B, :params["num_classes"]]


if __name__ == "__main__":
    params = init_params(width_coefficient=1.0, depth_coefficient=1.0,
                         num_classes=1000, seed=1234)
    x = jax.random.normal(jax.random.PRNGKey(0), (2, 3, 32, 32), jnp.float32)
    out = efficientnet_forward(params, x)
    out = jax.block_until_ready(out)
    assert out.shape == (2, 1000), out.shape
    assert bool(jnp.all(jnp.isfinite(out)))
    print("KERNEL_OK")
</pallas_src>

<mosaic_0001>
module attributes {stable_mosaic.version = 11 : i64} {
  func.func @_mm_kernel(%arg0: i32, %arg1: i32, %arg2: memref<1x256x128xbf16, #tpu.memory_space<vmem>>, %arg3: memref<128x128xbf16, #tpu.memory_space<vmem>>, %arg4: memref<1x128xf32, #tpu.memory_space<vmem>>, %arg5: memref<1x128xf32, #tpu.memory_space<vmem>>, %arg6: memref<1x256x128xbf16, #tpu.memory_space<vmem>>) attributes {dimension_semantics = [#tpu.dimension_semantics<parallel>, #tpu.dimension_semantics<parallel>], iteration_bounds = array<i64: 2, 1>, scalar_prefetch = 0 : i64, scratch_operands = 0 : i64, tpu.core_type = #tpu.core_type<tc>, window_params = [{transform_indices = @transform_0, window_bounds = array<i64: 1, 256, 128>}, {pipeline_mode = #tpu.pipeline_mode<synchronous>, transform_indices = @transform_1, window_bounds = array<i64: 128, 128>}, {pipeline_mode = #tpu.pipeline_mode<synchronous>, transform_indices = @transform_2, window_bounds = array<i64: 1, 128>}, {pipeline_mode = #tpu.pipeline_mode<synchronous>, transform_indices = @transform_3, window_bounds = array<i64: 1, 128>}, {transform_indices = @transform_4, window_bounds = array<i64: 1, 256, 128>}]} {
    %c0 = arith.constant 0 : index
    %c0_0 = arith.constant 0 : index
    %c0_1 = arith.constant 0 : index
    %0 = vector.load %arg2[%c0, %c0_0, %c0_1] : memref<1x256x128xbf16, #tpu.memory_space<vmem>>, vector<1x256x128xbf16>
    %1 = vector.shape_cast %0 : vector<1x256x128xbf16> to vector<256x128xbf16>
    %c0_2 = arith.constant 0 : index
    %c0_3 = arith.constant 0 : index
    %2 = vector.load %arg3[%c0_2, %c0_3] : memref<128x128xbf16, #tpu.memory_space<vmem>>, vector<128x128xbf16>
    %cst = arith.constant dense<0.000000e+00> : vector<256x128xf32>
    %3 = tpu.matmul %1, %2, %cst {dimension_numbers = #tpu.dot_dimension_numbers<[1], [0], [0], [1], [0, 0, 1, 1], [], []>} : vector<256x128xbf16>, vector<128x128xbf16>, vector<256x128xf32> -> vector<256x128xf32>
    %c0_4 = arith.constant 0 : index
    %c0_5 = arith.constant 0 : index
    %4 = vector.load %arg4[%c0_4, %c0_5] : memref<1x128xf32, #tpu.memory_space<vmem>>, vector<1x128xf32>
    %5 = vector.broadcast %4 : vector<1x128xf32> to vector<256x128xf32>
    %6 = arith.mulf %3, %5 : vector<256x128xf32>
    %c0_6 = arith.constant 0 : index
    %c0_7 = arith.constant 0 : index
    %7 = vector.load %arg5[%c0_6, %c0_7] : memref<1x128xf32, #tpu.memory_space<vmem>>, vector<1x128xf32>
    %8 = vector.broadcast %7 : vector<1x128xf32> to vector<256x128xf32>
    %9 = arith.addf %6, %8 : vector<256x128xf32>
    %10 = arith.negf %9 : vector<256x128xf32>
    %11 = math.exp %10 : vector<256x128xf32>
    %cst_8 = arith.constant 1.000000e+00 : f32
    %12 = vector.broadcast %cst_8 : f32 to vector<256x128xf32>
    %13 = arith.addf %12, %11 : vector<256x128xf32>
    %14 = arith.divf %12, %13 : vector<256x128xf32>
    %15 = arith.mulf %9, %14 : vector<256x128xf32>
    %16 = arith.truncf %15 : vector<256x128xf32> to vector<256x128xbf16>
    %c0_9 = arith.constant 0 : index
    %c0_10 = arith.constant 0 : index
    %c0_11 = arith.constant 0 : index
    %17 = vector.load %arg6[%c0_9, %c0_10, %c0_11] : memref<1x256x128xbf16, #tpu.memory_space<vmem>>, vector<1x256x128xbf16>
    %18 = vector.shape_cast %17 : vector<1x256x128xbf16> to vector<256x128xbf16>
    %19 = vector.shape_cast %16 : vector<256x128xbf16> to vector<1x256x128xbf16>
    tpu.vector_store %arg6[%c0_9, %c0_10, %c0_11], %19 {strides = array<i32>} : memref<1x256x128xbf16, #tpu.memory_space<vmem>>, vector<1x256x128xbf16>,
    return
  }
  func.func @transform_0(%arg0: i32, %arg1: i32) -> (i32, i32, i32) {
    %c0_i32 = arith.constant 0 : i32
    %c0_i32_0 = arith.constant 0 : i32
    return %arg0, %arg1, %c0_i32 : i32, i32, i32
  }
  func.func @transform_1(%arg0: i32, %arg1: i32) -> (i32, i32) {
    %c0_i32 = arith.constant 0 : i32
    %c0_i32_0 = arith.constant 0 : i32
    %c0_i32_1 = arith.constant 0 : i32
    return %c0_i32, %c0_i32_0 : i32, i32
  }
  func.func @transform_2(%arg0: i32, %arg1: i32) -> (i32, i32) {
    %c0_i32 = arith.constant 0 : i32
    %c0_i32_0 = arith.constant 0 : i32
    %c0_i32_1 = arith.constant 0 : i32
    return %c0_i32, %c0_i32_0 : i32, i32
  }
  func.func @transform_3(%arg0: i32, %arg1: i32) -> (i32, i32) {
    %c0_i32 = arith.constant 0 : i32
    %c0_i32_0 = arith.constant 0 : i32
    %c0_i32_1 = arith.constant 0 : i32
    return %c0_i32, %c0_i32_0 : i32, i32
  }
  func.func @transform_4(%arg0: i32, %arg1: i32) -> (i32, i32, i32) {
    %c0_i32 = arith.constant 0 : i32
    %c0_i32_0 = arith.constant 0 : i32
    return %arg0, %arg1, %c0_i32 : i32, i32, i32
  }
}

</mosaic_0001>

<bundles_post_ra>
// kernel: tpu_custom_call.1
= control target key start
LH: loop header
LB: loop body
LE: loop exit
PB: predicated region body
PF: predicated region fallthrough
CT: control target
= control target key end

     0   :  { %s3194_s0 = inlined_call_operand.hbm [shape: bf16[2,256,128], index: 0, kind: input, shape index: {}]   ;;  %s3195_s1 = inlined_call_operand.hbm [shape: bf16[128,128], index: 1, kind: input, shape index: {}]   ;;  %s3196_s2 = inlined_call_operand.vmem [shape: f32[1,128], index: 2, kind: input, shape index: {}]   ;;  %s3197_s3 = inlined_call_operand.vmem [shape: f32[1,128], index: 3, kind: input, shape index: {}]   ;;  %s3198_s4 = inlined_call_operand.hbm [shape: bf16[2,256,128], index: 4, kind: output, shape index: {}]  }
   0x1   :  { %3202 = sst [smem:[#allocation12_spill]] %s3195_s1 }
   0x2   :  { %9 = vsyncpa [#allocation3], 0 }
   0x3   :  { %11 = vsyncpa [#allocation3 + $0x1], 0 }
   0x4   :  { %12 = vsyncpa [#allocation6], 0 }
   0x5   :  { %13 = vsyncpa [#allocation4], 0 }
   0x6   :  { %15 = vsyncpa [#allocation4 + $0x1], 0  ;;  %s2104_s15 = smov 0   ;;  %s2106_s16 = smov 0  }
   0x7   :  { %s2108_s17 = smov 0   ;;  %s2110_s18 = smov 0  }
   0x8   :  { %s2112_s19 = smov 0   ;;  %s2114_s20 = smov 0  }
   0x9 LB: > { %s1427_s21 = sadd.s32 4294967295, %s2072_s20   ;;  %s1428_s22 = sadd.s32 4294967294, %s2072_s20   ;;  %s2072_s20 = sphi %s2114_s20, %s21_s20   ;;  %s2068_s19 = sphi %s2112_s19, %s3299_s19   ;;  %s2064_s18 = sphi %s2110_s18, %s3298_s18   ;;  %s2060_s17 = sphi %s2108_s17, %s3297_s17   ;;  %s2056_s16 = sphi %s2106_s16, %s3296_s16   ;;  %s2052_s15 = sphi %s2104_s15, %s3295_s15  }
   0xa   : > { %p55_p0 = scmp.ne.s32.totalorder %s2056_s16, %s2052_s15  ;;  %p2138_p1 = scmp.eq.s32.totalorder %s1427_s21, 0 }
   0xb   : > { %p2142_p2 = scmp.eq.s32.totalorder %s1427_s21, 1  ;;  %p150_p3 = scmp.eq.s32.totalorder %s1428_s22, 1 }
   0xc   : > { %p2148_p4 = por %p2138_p1, %p55_p0  ;;  %p1429_p5 = scmp.ge.s32.totalorder %s2072_s20, 1 }
   0xd   : > { %p2153_p6 = por %p150_p3, %p55_p0  ;;  %p157_p7 = scmp.lt.s32.totalorder %s2072_s20, 3 }
   0xe   : > { %s3207_s1 = sld [smem:[#allocation12_spill]]  ;;  %s2074_s5 = smov [#allocation5]  }
   0xf   : > { %p2161_p8 = pnand %p1429_p5, %p157_p7  ;;  %s170_s6 = sshll.u32 %s2074_s5, 4  ;;  %s171_s6 = int_to_ptr.vmem [resolvable:$true] %s170_s6 }
  0x10   : > { %p1431_p11 = scmp.ge.s32.totalorder %s2072_s20, 2  ;;  %s3199_s7 = smov 64  }
  0x11   : > { %p1725_p9 = pneg %p2161_p8  ;;  %s3200_s8 = smov 4  }
  0x12   : > { %s33_s9 = sadd.s32 1, %s2068_s19  ;;  %s42_s10 = sadd.s32 1, %s2060_s17 }
  0x13   : > { %p1726_p10 = pnand %p1725_p9, %p2138_p1  ;;  %p35_p12 = scmp.ge.s32.totalorder %s33_s9, 2 }
  0x14   : > { %s168_s29 = sshll.u32 %s3207_s1, 4  ;;  %p49_p13 = scmp.ne.s32.totalorder %s2060_s17, %s2056_s16  ;;  %s169_s29 = int_to_ptr.hbm [resolvable:$true] %s168_s29 }
  0x15   : > { %1728 = dma.hbm_to_vmem [thread:$0]  (!%p1726_p10), %s169_s29, 1024, %s171_s6, [#allocation6], %s3199_s7, %s3199_s7, %s3200_s8  }
  0x16   : > { %p50_p0 = scmp.eq.s32.totalorder %s2072_s20, 0  ;;  %s3301_s9 = smov (%p35_p12, %s33_s9), 0 }
  0x17   : > { %3209 = sst [smem:[#allocation11_spill]] %s3301_s9  ;;  %p2186_p5 = por %p2142_p2, %p49_p13 }
  0x18   : > { %p2180_p3 = por %p50_p0, %p49_p13  ;;  %s37_s13 = ssub.s32 %s2068_s19, %s3301_s9 }
  0x19   : > { %p1738_p7 = scmp.lt.s32.totalorder %s2072_s20, 2  ;;  %p40_p9 = scmp.eq.s32.totalorder %s37_s13, 0 }
  0x1a   : > { %s190_s14 = sand.u32 1, %s2060_s17   ;;  %s1572_s27 = sshll.u32 %s2068_s19, 7 }
  0x1b   : > { %s1432_s21 = sshll.u32 %s190_s14, 7  ;;  %s201_s5 = scalar_lea.hbm %s3194_s0, %s1572_s27 }
  0x1c   : > { %s2195_s22 = scalar_select %p40_p9, %s2060_s17, %s42_s10  }
  0x1d   : > { %s194_s6 = scalar_lea.vmem [#allocation2], %s1432_s21  ;;  %s202_s24 = sshll.u32 %s201_s5, 4  ;;  %s203_s24 = int_to_ptr.hbm [resolvable:$true] %s202_s24 }
  0x1e   : > { %s204_s7 = sshll.u32 %s194_s6, 4  ;;  %p1730_p2 = pnand %p1738_p7, %p2180_p3  ;;  %s205_s7 = int_to_ptr.vmem [resolvable:$true] %s204_s7 }
  0x1f   : > { %s191_s8 = scalar_lea.sflag [#allocation3], %s190_s14  ;;  %s3212_s1 = smov 4  }
  0x20   : > { %s3213_s9 = smov 64   ;;  %216 = sbr.rel (%p2161_p8) target bundleno = 373 (0x175), region = 36 }
  0x21   : > { %1732 = dma.hbm_to_vmem [thread:$0]  (!%p1730_p2), %s203_s24, 2048, %s205_s7, %s191_s8, %s3213_s9, %s3213_s9, %s3212_s1  }
  0x22   : > { %s2209_s10 = sand.u32 (!%p2161_p8), 1, %s2056_s16  }
  0x23   : > { %s1436_s13 = sshll.u32 (!%p2161_p8), %s2209_s10, 7  ;;  %s219_s21 = scalar_lea.sflag (!%p2161_p8), [#allocation3], %s2209_s10 }
  0x24   : > { %s2215_s11 = scalar_lea.vmem (!%p2161_p8), [#allocation2], %s1436_s13 }
  0x25   : > { %2039 = dma.done.wait (%p2148_p4), %s219_s21, 2048  }
  0x26   : > { %2041 = vsyncadd (%p2148_p4), %s219_s21, 4294965248 }
  0x27   : > { %2043 = dma.done.wait (%p2138_p1), [#allocation6], 1024  }
  0x28   : > { %2045 = vsyncadd (%p2138_p1), [#allocation6], 4294966272  ;;  %v1596_v0 = vld [vmem:[#allocation5 + $0x38] sm:$0xff]  ;;  %v1595_v1 = vld [vmem:[#allocation5 + $0x30] sm:$0xff]  ;;  %s2483_s7 = scalar_lea.vmem [#allocation7], %s1436_s13  ;;  %s1597_s28 = sshll.u32 %s2064_s18, 7 }
  0x29   : > { %447 = vmatpush.bf16.msra.mxu0 %v1596_v0  ;;  %1693 = vmatpush.bf16.msra.mxu1 %v1596_v0  ;;  %v1594_v2 = vld [vmem:[#allocation5 + $0x28] sm:$0xff]  ;;  %v1593_v3 = vld [vmem:[#allocation5 + $0x20] sm:$0xff]  ;;  %v1592_v4 = vld [vmem:[#allocation5 + $0x18] sm:$0xff]  ;;  %s1326_s5 = scalar_lea.hbm %s3198_s4, %s1597_s28  ;;  %s1327_s6 = sshll.u32 %s2483_s7, 4  ;;  %s1328_s6 = int_to_ptr.vmem [resolvable:$true] %s1327_s6 }
  0x2a   : > { %1694 = vmatpush.bf16.msra.mxu2 %v1596_v0  ;;  %1695 = vmatpush.bf16.msra.mxu3 %v1596_v0  ;;  %v1591_v5 = vld [vmem:[#allocation5 + $0x10] sm:$0xff]  ;;  %v1590_v6 = vld [vmem:[#allocation5 + $0x8] sm:$0xff]  ;;  %v1589_v7 = vld [vmem:[#allocation5] sm:$0xff]  ;;  %s1329_s24 = sshll.u32 %s1326_s5, 4  ;;  %s1313_s13 = scalar_lea.sflag [#allocation4], %s2209_s10  ;;  %s1330_s24 = int_to_ptr.hbm [resolvable:$true] %s1329_s24 }
  0x2b   : > { %v1573_v8 = vld [vmem:[%s2215_s11] sm:$0xff]  ;;  %v1574_v12 = vld [vmem:[%s2215_s11 + $0x8] sm:$0xff]  ;;  %v1575_v16 = vld [vmem:[%s2215_s11 + $0x10] sm:$0xff]  ;;  %s2000_s21 = sshra.s32 %s1330_s24, 4  ;;  %s2006_s25 = scalar_lea.hbm %s3198_s4, 256  ;;  %s2001_s21 = int_to_ptr.hbm [resolvable:$true] %s2000_s21 }
  0x2c   : > { %v1577_v9 = vld [vmem:[%s2215_s11 + $0x20] sm:$0xff]  ;;  %v1578_v13 = vld [vmem:[%s2215_s11 + $0x28] sm:$0xff]  ;;  %v1579_v17 = vld [vmem:[%s2215_s11 + $0x30] sm:$0xff]  ;;  %p2007_p10 = scmp.lt.s32.totalorder %s2001_s21, %s3198_s4 }
  0x2d   : > { %448 = vmatpush.bf16.msra.mxu0 %v1595_v1  ;;  %1696 = vmatpush.bf16.msra.mxu1 %v1595_v1  ;;  %v1581_v10 = vld [vmem:[%s2215_s11 + $0x40] sm:$0xff]  ;;  %v1582_v14 = vld [vmem:[%s2215_s11 + $0x48] sm:$0xff]  ;;  %v1583_v18 = vld [vmem:[%s2215_s11 + $0x50] sm:$0xff] }
  0x2e   : > { %1697 = vmatpush.bf16.msra.mxu2 %v1595_v1  ;;  %1698 = vmatpush.bf16.msra.mxu3 %v1595_v1  ;;  %v1585_v11 = vld [vmem:[%s2215_s11 + $0x60] sm:$0xff]  ;;  %v1586_v15 = vld [vmem:[%s2215_s11 + $0x68] sm:$0xff]  ;;  %v1587_v19 = vld [vmem:[%s2215_s11 + $0x70] sm:$0xff] }
  0x2f   : > { %v1576_v20 = vld [vmem:[%s2215_s11 + $0x18] sm:$0xff]  ;;  %v2244_v24 = vld [vmem:[%s3196_s2] ss:$0 sm:$0xff] }
  0x30   : > { %v1580_v21 = vld [vmem:[%s2215_s11 + $0x38] sm:$0xff]  ;;  %v2249_v25 = vld [vmem:[%s3197_s3] ss:$0 sm:$0xff] }
  0x31   : > { %449 = vmatpush.bf16.msra.mxu0 %v1594_v2  ;;  %1699 = vmatpush.bf16.msra.mxu1 %v1594_v2  ;;  %v1584_v22 = vld [vmem:[%s2215_s11 + $0x58] sm:$0xff] }
  0x32   : > { %1700 = vmatpush.bf16.msra.mxu2 %v1594_v2  ;;  %1701 = vmatpush.bf16.msra.mxu3 %v1594_v2  ;;  %v1588_v23 = vld [vmem:[%s2215_s11 + $0x78] sm:$0xff]  ;;  %s2002_s11 = scalar_lea.hbm %s2001_s21, 128 }
  0x33   : > { %p2003_p1 = scmp.ne.s32.totalorder %s2001_s21, %s2002_s11  ;;  %p2008_p12 = scmp.lt.s32.totalorder %s2006_s25, %s2002_s11 }
  0x35   : > { %450 = vmatpush.bf16.msra.mxu0 %v1593_v3  ;;  %1702 = vmatpush.bf16.msra.mxu1 %v1593_v3  ;;  %p2004_p4 = pnand %p2003_p1, %p2186_p5  ;;  %p2009_p13 = por %p2008_p12, %p2007_p10 }
  0x36   : > { %1703 = vmatpush.bf16.msra.mxu2 %v1593_v3  ;;  %1704 = vmatpush.bf16.msra.mxu3 %v1593_v3 }
  0x37   : > { %p2005_p8 = pneg %p2004_p4 }
  0x39   : > { %451 = vmatpush.bf16.msra.mxu0 %v1592_v4  ;;  %1705 = vmatpush.bf16.msra.mxu1 %v1592_v4  ;;  %p2010_p0 = pnand %p2009_p13, %p2005_p8 }
  0x3a   : > { %1706 = vmatpush.bf16.msra.mxu2 %v1592_v4  ;;  %1707 = vmatpush.bf16.msra.mxu3 %v1592_v4 }
  0x3d   : > { %452 = vmatpush.bf16.msra.mxu0 %v1591_v5  ;;  %1708 = vmatpush.bf16.msra.mxu1 %v1591_v5 }
  0x3e   : > { %1709 = vmatpush.bf16.msra.mxu2 %v1591_v5  ;;  %1710 = vmatpush.bf16.msra.mxu3 %v1591_v5 }
  0x41   : > { %453 = vmatpush.bf16.msra.mxu0 %v1590_v6  ;;  %1711 = vmatpush.bf16.msra.mxu1 %v1590_v6 }
  0x42   : > { %1712 = vmatpush.bf16.msra.mxu2 %v1590_v6  ;;  %1713 = vmatpush.bf16.msra.mxu3 %v1590_v6 }
  0x45   : > { %454 = vmatpush.bf16.msra.mxu0 %v1589_v7  ;;  %1714 = vmatpush.bf16.msra.mxu1 %v1589_v7 }
  0x46   : > { %1715 = vmatpush.bf16.msra.mxu2 %v1589_v7  ;;  %1716 = vmatpush.bf16.msra.mxu3 %v1589_v7 }
  0x48   : > { %455 = vmatmul.bf16.vlgmr.msra.gmra.mxu0 %v1573_v8  ;;  %475 = vmatmul.bf16.vlgmr.msra.gmra.mxu1 %v1577_v9 }
  0x49   : > { %495 = vmatmul.bf16.vlgmr.msra.gmra.mxu2 %v1581_v10  ;;  %515 = vmatmul.bf16.vlgmr.msra.gmra.mxu3 %v1585_v11 }
  0x58   : > { %460 = vmatmul.bf16.gmra.mxu0 %v1574_v12  ;;  %480 = vmatmul.bf16.gmra.mxu1 %v1578_v13 }
  0x59   : > { %500 = vmatmul.bf16.gmra.mxu2 %v1582_v14  ;;  %520 = vmatmul.bf16.gmra.mxu3 %v1586_v15 }
  0x68   : > { %465 = vmatmul.bf16.gmra.mxu0 %v1575_v16  ;;  %485 = vmatmul.bf16.gmra.mxu1 %v1579_v17 }
  0x69   : > { %505 = vmatmul.bf16.gmra.mxu2 %v1583_v18  ;;  %525 = vmatmul.bf16.gmra.mxu3 %v1587_v19 }
  0x78   : > { %470 = vmatmul.bf16.gmra.mxu0 %v1576_v20  ;;  %490 = vmatmul.bf16.gmra.mxu1 %v1580_v21 }
  0x79   : > { %510 = vmatmul.bf16.gmra.mxu2 %v1584_v22  ;;  %530 = vmatmul.bf16.gmra.mxu3 %v1588_v23 }
  0xc5   : > { %v456_v26 = vpop.f32.mrf.mxu0  ;;  %v476_v27 = vpop.f32.mrf.mxu1 }
  0xc6   : > { %v540_v28 = vmul.f32 %v2244_v24, %v456_v26  ;;  %v548_v29 = vmul.f32 %v2244_v24, %v476_v27 }
  0xc8   : > { %v2254_v30 = vadd.f32 %v2249_v25, %v540_v28  ;;  %v2257_v31 = vadd.f32 %v2249_v25, %v548_v29 }
  0xca   : > { %v1535_v32 = vmul.f32 -1.442695, %v2254_v30  ;;  %v1543_v33 = vmul.f32 -1.442695, %v2257_v31 }
  0xcc   : > { %1796 = vpow2.f32 %v1535_v32  ;;  %v496_v34 = vpop.f32.mrf.mxu2  ;;  %v516_v35 = vpop.f32.mrf.mxu3 }
  0xcd   : > { %1798 = vpow2.f32 %v1543_v33  ;;  %v556_v36 = vmul.f32 %v2244_v24, %v496_v34  ;;  %v564_v37 = vmul.f32 %v2244_v24, %v516_v35  ;;  %v458_v38 = vpop.f32.mrf.mxu0  ;;  %v478_v39 = vpop.f32.mrf.mxu1 }
  0xce   : > { %v541_v40 = vmul.f32 %v2244_v24, %v458_v38  ;;  %v549_v41 = vmul.f32 %v2244_v24, %v478_v39 }
  0xcf   : > { %v2266_v42 = vadd.f32 %v2249_v25, %v556_v36  ;;  %v2269_v43 = vadd.f32 %v2249_v25, %v564_v37 }
  0xd0   : > { %v2272_v44 = vadd.f32 %v2249_v25, %v541_v40  ;;  %v2275_v45 = vadd.f32 %v2249_v25, %v549_v41 }
  0xd1   : > { %v1551_v46 = vmul.f32 -1.442695, %v2266_v42  ;;  %v1559_v47 = vmul.f32 -1.442695, %v2269_v43 }
  0xd2   : > { %v1797_v48 = vpop.eup %1796  ;;  %v1536_v51 = vmul.f32 -1.442695, %v2272_v44  ;;  %v1544_v53 = vmul.f32 -1.442695, %v2275_v45 }
  0xd3   : > { %v1799_v49 = vpop.eup %1798  ;;  %v2279_v50 = vadd.f32 1.0, %v1797_v48  ;;  %1800 = vpow2.f32 %v1551_v46 }
  0xd4   : > { %v2282_v52 = vadd.f32 1.0, %v1799_v49  ;;  %1802 = vpow2.f32 %v1559_v47  ;;  %v498_v54 = vpop.f32.mrf.mxu2  ;;  %v518_v58 = vpop.f32.mrf.mxu3 }
  0xd5   : > { %1804 = vrcp.f32 %v2279_v50  ;;  %v557_v55 = vmul.f32 %v2244_v24, %v498_v54  ;;  %v747_v62 = vand.u32 2147483648, %v2279_v50  ;;  %v745_v2 = vand.u32 2147483647, %v2279_v50  ;;  %v461_v4 = vpop.f32.mrf.mxu0  ;;  %v481_v5 = vpop.f32.mrf.mxu1 }
  0xd6   : > { %1806 = vrcp.f32 %v2282_v52  ;;  %v565_v3 = vmul.f32 %v2244_v24, %v518_v58  ;;  %vm741_vm0 = vweird.f32 %v2279_v50  ;;  %v867_v8 = vand.u32 2147483648, %v2282_v52 }
  0xd7   : > { %1808 = vpow2.f32 %v1536_v51  ;;  %v2289_v57 = vadd.f32 %v2249_v25, %v557_v55  ;;  %vm861_vm1 = vweird.f32 %v2282_v52  ;;  %v865_v12 = vand.u32 2147483647, %v2282_v52 }
  0xd8   : > { %1810 = vpow2.f32 %v1544_v53  ;;  %v748_v13 = vor.u32 1.1754944e-38, %v747_v62  ;;  %v542_v15 = vmul.f32 %v2244_v24, %v461_v4  ;;  %v550_v16 = vmul.f32 %v2244_v24, %v481_v5 }
  0xd9   : > { %v1801_v56 = vpop.eup %1800  ;;  %v1552_v9 = vmul.f32 -1.442695, %v2289_v57  ;;  %vm2316_vm2 = vcmp.eq.f32.partialorder %v745_v2, 8.507059e+37  ;;  %v2325_v21 = vadd.f32 %v2249_v25, %v565_v3  ;;  %v868_v23 = vor.u32 1.1754944e-38, %v867_v8 }
  0xda   : > { %v1803_v59 = vpop.eup %1802  ;;  %v2291_v60 = vadd.f32 1.0, %v1801_v56  ;;  %vm2332_vm4 = vcmp.eq.f32.partialorder %v865_v12, 8.507059e+37  ;;  %v2343_v35 = vadd.f32 %v2249_v25, %v542_v15  ;;  %v2346_v36 = vadd.f32 %v2249_v25, %v550_v16 }
  0xdb   : > { %v2293_v61 = vpop.eup %1804  ;;  %v2296_v63 = vadd.f32 1.0, %v1803_v59  ;;  %v1560_v39 = vmul.f32 -1.442695, %v2325_v21 }
  0xdc   : > { %v2298_v0 = vpop.eup %1806  ;;  %v737_v1 = vmul.f32 %v2293_v61, %v2279_v50  ;;  %1812 = vrcp.f32 %v2291_v60  ;;  %vm742_vm3 = vweird.f32 %v2293_v61  ;;  %v987_v29 = vand.u32 2147483648, %v2291_v60 }
  0xdd   : > { %v1809_v6 = vpop.eup %1808  ;;  %v857_v7 = vmul.f32 %v2298_v0, %v2282_v52  ;;  %1814 = vrcp.f32 %v2296_v63  ;;  %v1107_v32 = vand.u32 2147483648, %v2296_v63  ;;  %v985_v34 = vand.u32 2147483647, %v2291_v60  ;;  %vm2358_vm6 = vmor %vm741_vm0, %vm742_vm3  ;;  %v463_v40 = vpop.f32.mrf.mxu0 }
  0xde   : > { %v1811_v10 = vpop.eup %1810  ;;  %v738_v11 = vsub.f32 1.0, %v737_v1  ;;  %v2320_v19 = vadd.f32 1.0, %v1809_v6  ;;  %1816 = vpow2.f32 %v1552_v9  ;;  %vm862_vm5 = vweird.f32 %v2298_v0 }
  0xdf   : > { %v858_v14 = vsub.f32 1.0, %v857_v7  ;;  %v2322_v20 = vadd.f32 1.0, %v1811_v10  ;;  %vm981_vm7 = vweird.f32 %v2291_v60  ;;  %v988_v49 = vor.u32 1.1754944e-38, %v987_v29  ;;  %vm2374_vm8 = vmor %vm861_vm1, %vm862_vm5 }
  0xe0   : > { %v739_v17 = vmul.f32 %v2293_v61, %v738_v11  ;;  %1818 = vrcp.f32 %v2320_v19  ;;  %v760_v47 = vand.u32 2147483647, %v2320_v19  ;;  %v1105_v51 = vand.u32 2147483647, %v2296_v63  ;;  %v501_v11 = vpop.f32.mrf.mxu2 }
  0xe1   : > { %v859_v22 = vmul.f32 %v2298_v0, %v858_v14  ;;  %1820 = vrcp.f32 %v2322_v20  ;;  %v2370_v50 = vor.u32 1.1754944e-38, %v1107_v32  ;;  %vm2380_vm10 = vcmp.eq.f32.partialorder %v985_v34, 8.507059e+37  ;;  %v521_v32 = vpop.f32.mrf.mxu3 }
  0xe2   : > { %v2329_v26 = vpop.eup %1812  ;;  %v740_v27 = vadd.f32 %v2293_v61, %v739_v17  ;;  %vm756_vm11 = vweird.f32 %v2320_v19  ;;  %v762_v58 = vand.u32 2147483648, %v2320_v19  ;;  %1822 = vpow2.f32 %v1560_v39 }
  0xe3   : > { %v977_v33 = vmul.f32 %v2329_v26, %v2291_v60  ;;  %v2348_v37 = vpop.eup %1814  ;;  %v860_v38 = vadd.f32 %v2298_v0, %v859_v22  ;;  %vm982_vm9 = vweird.f32 %v2329_v26  ;;  %vm2395_vm12 = vcmp.eq.f32.partialorder %v760_v47, 8.507059e+37 }
  0xe4   : > { %v1097_v46 = vmul.f32 %v2348_v37, %v2296_v63  ;;  %v744_v48 = vsel %vm2358_vm6, %v2293_v61, %v740_v27  ;;  %v1817_v53 = vpop.eup %1816  ;;  %vm1101_vm13 = vweird.f32 %v2296_v63  ;;  %v882_v6 = vand.u32 2147483648, %v2322_v20  ;;  %vm2413_vm15 = vmor %vm981_vm7, %vm982_vm9 }
  0xe5   : > { %v978_v41 = vsub.f32 1.0, %v977_v33  ;;  %v864_v52 = vsel %vm2374_vm8, %v2298_v0, %v860_v38  ;;  %v2389_v62 = vadd.f32 1.0, %v1817_v53  ;;  %v749_v1 = vsel %vm2316_vm2, %v748_v13, %v744_v48 }
  0xe6   : > { %v1819_v59 = vpop.eup %1818  ;;  %v1098_v61 = vsub.f32 1.0, %v1097_v46  ;;  %v880_v0 = vand.u32 2147483647, %v2322_v20  ;;  %v1537_v7 = vmul.f32 -1.442695, %v2343_v35  ;;  %v869_v8 = vsel %vm2332_vm4, %v868_v23, %v864_v52 }
  0xe7   : > { %v979_v55 = vmul.f32 %v2329_v26, %v978_v41  ;;  %v752_v3 = vmul.f32 %v1819_v59, %v2320_v19  ;;  %v1821_v5 = vpop.eup %1820  ;;  %1824 = vrcp.f32 %v2389_v62  ;;  %vm876_vm14 = vweird.f32 %v2322_v20 }
  0xe8   : > { %v872_v10 = vmul.f32 %v1821_v5, %v2322_v20  ;;  %v1216_v12 = vmul.f32 %v749_v1, %v2254_v30  ;;  %v1099_v14 = vmul.f32 %v2348_v37, %v1098_v61  ;;  %vm1102_vm0 = vweird.f32 %v2348_v37  ;;  %v1823_v18 = vpop.eup %1822 }
  0xe9   : > { %v980_v2 = vadd.f32 %v2329_v26, %v979_v55  ;;  %v753_v9 = vsub.f32 1.0, %v752_v3  ;;  %v763_v15 = vor.u32 1.1754944e-38, %v762_v58  ;;  %vm757_vm1 = vweird.f32 %v1819_v59  ;;  %vm2456_vm8 = vmor %vm1101_vm13, %vm1102_vm0  ;;  %v503_v3 = vpop.f32.mrf.mxu2 }
  0xea   : > { %v873_v30 = vsub.f32 1.0, %v872_v10  ;;  %v1224_v22 = vmul.f32 %v869_v8, %v2257_v31  ;;  %vm2423_vm2 = vcmp.eq.f32.partialorder %v1105_v51, 8.507059e+37  ;;  %vm2427_vm3 = vcmp.eq.f32.partialorder %v880_v0, 8.507059e+37  ;;  %vm758_vm6 = vmor %vm756_vm11, %vm757_vm1 }
  0xeb   : > { %v984_v16 = vsel %vm2413_vm15, %v2329_v26, %v980_v2  ;;  %v754_v17 = vmul.f32 %v1819_v59, %v753_v9  ;;  %v883_v27 = vor.u32 1.1754944e-38, %v882_v6  ;;  %1826 = vpow2.f32 %v1537_v7  ;;  %v483_v2 = vpop.f32.mrf.mxu1 }
  0xec   : > { %v874_v29 = vmul.f32 %v1821_v5, %v873_v30  ;;  %vm877_vm4 = vweird.f32 %v1821_v5  ;;  %vm996_vm5 = vweird.f32 %v2389_v62  ;;  %v2432_v26 = vadd.f32 1.0, %v1823_v18 }
  0xed   : > { %v755_v28 = vadd.f32 %v1819_v59, %v754_v17  ;;  %v1825_v33 = vpop.eup %1824  ;;  %v989_v31 = vsel %vm2380_vm10, %v988_v49, %v984_v16  ;;  %v1100_v34 = vadd.f32 %v2348_v37, %v1099_v14  ;;  %v1545_v38 = vmul.f32 -1.442695, %v2346_v36  ;;  %vm878_vm7 = vmor %vm876_vm14, %vm877_vm4  ;;  %v523_v17 = vpop.f32.mrf.mxu3 }
  0xee   : > { %v558_v39 = vmul.f32 %v2244_v24, %v501_v11  ;;  %v875_v46 = vadd.f32 %v1821_v5, %v874_v29  ;;  %v992_v47 = vmul.f32 %v1825_v33, %v2389_v62  ;;  %v1000_v48 = vand.u32 2147483647, %v2389_v62 }
  0xef   : > { %v759_v41 = vsel %vm758_vm6, %v1819_v59, %v755_v28  ;;  %v1002_v19 = vand.u32 2147483648, %v2389_v62  ;;  %1828 = vrcp.f32 %v2432_v26  ;;  %v566_v51 = vmul.f32 %v2244_v24, %v521_v32 }
  0xf0   : > { %v764_v49 = vsel %vm2395_vm12, %v763_v15, %v759_v41  ;;  %v879_v55 = vsel %vm878_vm7, %v1821_v5, %v875_v46  ;;  %v993_v56 = vsub.f32 1.0, %v992_v47  ;;  %v543_v20 = vmul.f32 %v2244_v24, %v463_v40 }
  0xf1   : > { %v1217_v54 = vmul.f32 %v764_v49, %v2272_v44  ;;  %v1827_v58 = vpop.eup %1826  ;;  %v1104_v59 = vsel %vm2456_vm8, %v2348_v37, %v1100_v34  ;;  %v884_v52 = vsel %vm2427_vm3, %v883_v27, %v879_v55  ;;  %1830 = vpow2.f32 %v1545_v38 }
  0xf2   : > { %v2468_v63 = vadd.f32 %v2249_v25, %v558_v39  ;;  %v1225_v44 = vmul.f32 %v884_v52, %v2275_v45  ;;  %v994_v1 = vmul.f32 %v1825_v33, %v993_v56  ;;  %vm997_vm9 = vweird.f32 %v1825_v33 }
  0xf3   : > { %v1601_v61 = vpack.c.bf16 %v1217_v54, %v1216_v12  ;;  %v1232_v4 = vmul.f32 %v989_v31, %v2266_v42  ;;  %v2472_v5 = vadd.f32 1.0, %v1827_v58  ;;  %v2476_v0 = vadd.f32 %v2249_v25, %v566_v51  ;;  %vm998_vm10 = vmor %vm996_vm5, %vm997_vm9 }
  0xf4   : > { %v1553_v37 = vmul.f32 -1.442695, %v2468_v63  ;;  %v1109_v6 = vsel %vm2423_vm2, %v2370_v50, %v1104_v59  ;;  %v1621_v45 = vpack.c.bf16 %v1225_v44, %v1224_v22  ;;  %v995_v7 = vadd.f32 %v1825_v33, %v994_v1 }
  0xf5   : > { %1602 = vst [vmem:[%s2483_s7] sm:$0xff] %v1601_v61   ;;  %v2487_v42 = vadd.f32 %v2249_v25, %v543_v20  ;;  %v1829_v8 = vpop.eup %1828  ;;  %v1003_v9 = vor.u32 1.1754944e-38, %v1002_v19  ;;  %1832 = vrcp.f32 %v2472_v5  ;;  %v551_v50 = vmul.f32 %v2244_v24, %v483_v2 }
  0xf6   : > { %v559_v10 = vmul.f32 %v2244_v24, %v503_v3  ;;  %1681 = vst [vmem:[%s2483_s7 + $0x20] sm:$0xff] %v1621_v45   ;;  %v999_v11 = vsel %vm998_vm10, %v1825_v33, %v995_v7  ;;  %vm1001_vm11 = vcmp.eq.f32.partialorder %v1000_v48, 8.507059e+37  ;;  %v1112_v12 = vmul.f32 %v1829_v8, %v2432_v26 }
  0xf7   : > { %1834 = vpow2.f32 %v1553_v37  ;;  %v1831_v13 = vpop.eup %1830  ;;  %v1004_v14 = vsel %vm1001_vm11, %v1003_v9, %v999_v11  ;;  %v1120_v15 = vand.u32 2147483647, %v2432_v26  ;;  %v1122_v62 = vand.u32 2147483648, %v2432_v26 }
  0xf8   : > { %v1561_v16 = vmul.f32 -1.442695, %v2476_v0  ;;  %v1233_v30 = vmul.f32 %v1004_v14, %v2289_v57  ;;  %v1113_v18 = vsub.f32 1.0, %v1112_v12  ;;  %v2500_v22 = vadd.f32 1.0, %v1831_v13 }
  0xf9   : > { %v1538_v60 = vmul.f32 -1.442695, %v2487_v42  ;;  %vm1117_vm12 = vweird.f32 %v1829_v8  ;;  %v2504_v23 = vadd.f32 %v2249_v25, %v551_v50  ;;  %v2507_v27 = vadd.f32 %v2249_v25, %v559_v10 }
  0xfa   : > { %1836 = vpow2.f32 %v1561_v16  ;;  %v1641_v28 = vpack.c.bf16 %v1233_v30, %v1232_v4  ;;  %v1114_v29 = vmul.f32 %v1829_v8, %v1113_v18  ;;  %v567_v57 = vmul.f32 %v2244_v24, %v523_v17 }
  0xfb   : > { %1838 = vrcp.f32 %v2500_v22  ;;  %v2511_v32 = vpop.eup %1832  ;;  %v1546_v33 = vmul.f32 -1.442695, %v2504_v23  ;;  %v1240_v34 = vmul.f32 %v1109_v6, %v2269_v43  ;;  %vm1116_vm13 = vweird.f32 %v2432_v26 }
  0xfc   : > { %1840 = vpow2.f32 %v1538_v60  ;;  %1685 = vst [vmem:[%s2483_s7 + $0x40] sm:$0xff] %v1641_v28   ;;  %v1115_v38 = vadd.f32 %v1829_v8, %v1114_v29  ;;  %v767_v39 = vmul.f32 %v2511_v32, %v2472_v5  ;;  %vm1118_vm14 = vmor %vm1116_vm13, %vm1117_vm12  ;;  %v1123_v40 = vor.u32 1.1754944e-38, %v1122_v62 }
  0xfd   : > { %v1835_v31 = vpop.eup %1834  ;;  %1842 = vpow2.f32 %v1546_v33  ;;  %v1554_v46 = vmul.f32 -1.442695, %v2507_v27  ;;  %vm1121_vm15 = vcmp.eq.f32.partialorder %v1120_v15, 8.507059e+37  ;;  %v2524_v43 = vadd.f32 %v2249_v25, %v567_v57 }
  0xfe   : > { %v2520_v41 = vadd.f32 1.0, %v1835_v31  ;;  %v1119_v47 = vsel %vm1118_vm14, %v1829_v8, %v1115_v38  ;;  %v768_v48 = vsub.f32 1.0, %v767_v39  ;;  %vm771_vm0 = vweird.f32 %v2472_v5 }
  0xff   : > { %v1124_v19 = vsel %vm1121_vm15, %v1123_v40, %v1119_v47  ;;  %v775_v26 = vand.u32 2147483647, %v2472_v5  ;;  %v777_v55 = vand.u32 2147483648, %v2472_v5  ;;  %v895_v59 = vand.u32 2147483647, %v2500_v22 }
 0x100   : > { %v1837_v49 = vpop.eup %1836  ;;  %1844 = vrcp.f32 %v2520_v41  ;;  %v1241_v53 = vmul.f32 %v1124_v19, %v2325_v21  ;;  %v769_v54 = vmul.f32 %v2511_v32, %v768_v48  ;;  %v1562_v52 = vmul.f32 -1.442695, %v2524_v43 }
 0x101   : > { %v2529_v51 = vpop.eup %1838  ;;  %v2534_v56 = vadd.f32 1.0, %v1837_v49  ;;  %1846 = vpow2.f32 %v1554_v46  ;;  %vm772_vm1 = vweird.f32 %v2511_v32  ;;  %vm2543_vm2 = vcmp.eq.f32.partialorder %v775_v26, 8.507059e+37 }
 0x102   : > { %v1841_v20 = vpop.eup %1840  ;;  %v887_v58 = vmul.f32 %v2529_v51, %v2500_v22  ;;  %v1661_v61 = vpack.c.bf16 %v1241_v53, %v1240_v34  ;;  %v770_v44 = vadd.f32 %v2511_v32, %v769_v54  ;;  %v897_v3 = vand.u32 2147483648, %v2500_v22  ;;  %vm2557_vm3 = vmor %vm771_vm0, %vm772_vm1  ;;  %v466_v53 = vpop.f32.mrf.mxu0 }
 0x103   : > { %1848 = vrcp.f32 %v2534_v56  ;;  %v1843_v21 = vpop.eup %1842  ;;  %v1015_v4 = vand.u32 2147483647, %v2520_v41  ;;  %v1017_v37 = vand.u32 2147483648, %v2520_v41  ;;  %v2551_v6 = vadd.f32 1.0, %v1841_v20  ;;  %v486_v54 = vpop.f32.mrf.mxu1 }
 0x104   : > { %v888_v2 = vsub.f32 1.0, %v887_v58  ;;  %1689 = vst [vmem:[%s2483_s7 + $0x60] sm:$0xff] %v1661_v61   ;;  %v2553_v45 = vadd.f32 1.0, %v1843_v21  ;;  %1850 = vpow2.f32 %v1562_v52  ;;  %v778_v9 = vor.u32 1.1754944e-38, %v777_v55 }
 0x105   : > { %vm891_vm4 = vweird.f32 %v2500_v22  ;;  %vm2563_vm5 = vcmp.eq.f32.partialorder %v895_v59, 8.507059e+37  ;;  %v774_v11 = vsel %vm2557_vm3, %v2511_v32, %v770_v44  ;;  %vm892_vm6 = vweird.f32 %v2529_v51  ;;  %v506_v59 = vpop.f32.mrf.mxu2 }
 0x106   : > { %v1845_v7 = vpop.eup %1844  ;;  %v889_v50 = vmul.f32 %v2529_v51, %v888_v2  ;;  %1852 = vrcp.f32 %v2551_v6  ;;  %v898_v14 = vor.u32 1.1754944e-38, %v897_v3  ;;  %vm1011_vm7 = vweird.f32 %v2520_v41  ;;  %vm2587_vm9 = vmor %vm891_vm4, %vm892_vm6 }
 0x107   : > { %v1007_v5 = vmul.f32 %v1845_v7, %v2520_v41  ;;  %v1847_v12 = vpop.eup %1846  ;;  %v1137_v15 = vand.u32 2147483648, %v2534_v56  ;;  %vm2578_vm8 = vcmp.eq.f32.partialorder %v1015_v4, 8.507059e+37  ;;  %v1018_v30 = vor.u32 1.1754944e-38, %v1017_v37 }
 0x108   : > { %v890_v13 = vadd.f32 %v2529_v51, %v889_v50  ;;  %1854 = vrcp.f32 %v2553_v45  ;;  %v779_v18 = vsel %vm2543_vm2, %v778_v9, %v774_v11  ;;  %vm1131_vm10 = vweird.f32 %v2534_v56 }
 0x109   : > { %v2576_v62 = vpop.eup %1848  ;;  %v1008_v16 = vsub.f32 1.0, %v1007_v5  ;;  %v1135_v29 = vand.u32 2147483647, %v2534_v56  ;;  %v790_v57 = vand.u32 2147483647, %v2551_v6  ;;  %vm1012_vm11 = vweird.f32 %v1845_v7 }
 0x10a   : > { %v1127_v28 = vmul.f32 %v2576_v62, %v2534_v56  ;;  %v1851_v32 = vpop.eup %1850  ;;  %v894_v33 = vsel %vm2587_vm9, %v2529_v51, %v890_v13  ;;  %v792_v22 = vand.u32 2147483648, %v2551_v6  ;;  %v2600_v38 = vor.u32 1.1754944e-38, %v1137_v15  ;;  %vm1013_vm14 = vmor %vm1011_vm7, %vm1012_vm11 }
 0x10b   : > { %v1009_v31 = vmul.f32 %v1845_v7, %v1008_v16  ;;  %v910_v39 = vand.u32 2147483647, %v2553_v45  ;;  %v2603_v40 = vadd.f32 1.0, %v1847_v12  ;;  %v2606_v47 = vmul.f32 %v779_v18, %v2343_v35 }
 0x10c   : > { %v1128_v34 = vsub.f32 1.0, %v1127_v28  ;;  %v1853_v46 = vpop.eup %1852  ;;  %vm1132_vm12 = vweird.f32 %v2576_v62  ;;  %vm786_vm13 = vweird.f32 %v2551_v6  ;;  %v899_v49 = vsel %vm2563_vm5, %v898_v14, %v894_v33  ;;  %v526_v28 = vpop.f32.mrf.mxu3 }
 0x10d   : > { %v1010_v48 = vadd.f32 %v1845_v7, %v1009_v31  ;;  %v782_v26 = vmul.f32 %v1853_v46, %v2551_v6  ;;  %vm2616_vm15 = vcmp.eq.f32.partialorder %v790_v57, 8.507059e+37  ;;  %vm906_vm0 = vweird.f32 %v2553_v45  ;;  %vm2648_vm3 = vmor %vm1131_vm10, %vm1132_vm12 }
 0x10e   : > { %v1129_v19 = vmul.f32 %v2576_v62, %v1128_v34  ;;  %v2621_v35 = vadd.f32 1.0, %v1851_v32  ;;  %v1855_v55 = vpop.eup %1854  ;;  %v793_v58 = vor.u32 1.1754944e-38, %v792_v22  ;;  %v912_v41 = vand.u32 2147483648, %v2553_v45 }
 0x10f   : > { %v1014_v20 = vsel %vm1013_vm14, %v1845_v7, %v1010_v48  ;;  %1856 = vrcp.f32 %v2603_v40  ;;  %v783_v44 = vsub.f32 1.0, %v782_v26  ;;  %v902_v21 = vmul.f32 %v1855_v55, %v2553_v45 }
 0x110   : > { %v1019_v52 = vsel %vm2578_vm8, %v1018_v30, %v1014_v20  ;;  %v2628_v61 = vadd.f32 %v2576_v62, %v1129_v19  ;;  %vm2631_vm1 = vcmp.eq.f32.partialorder %v910_v39, 8.507059e+37  ;;  %vm787_vm2 = vweird.f32 %v1853_v46  ;;  %v508_v19 = vpop.f32.mrf.mxu2 }
 0x111   : > { %v1032_v2 = vand.u32 2147483648, %v2603_v40  ;;  %v544_v3 = vmul.f32 %v2244_v24, %v466_v53  ;;  %v552_v4 = vmul.f32 %v2244_v24, %v486_v54  ;;  %v784_v37 = vmul.f32 %v1853_v46, %v783_v44  ;;  %vm788_vm7 = vmor %vm786_vm13, %vm787_vm2 }
 0x112   : > { %v903_v7 = vsub.f32 1.0, %v902_v21  ;;  %v1030_v8 = vand.u32 2147483647, %v2603_v40  ;;  %1858 = vrcp.f32 %v2621_v35  ;;  %v1226_v9 = vmul.f32 %v899_v49, %v2346_v36  ;;  %v488_v49 = vpop.f32.mrf.mxu1 }
 0x113   : > { %v2642_v50 = vmul.f32 %v1019_v52, %v2468_v63  ;;  %vm907_vm4 = vweird.f32 %v1855_v55  ;;  %v913_v11 = vor.u32 1.1754944e-38, %v912_v41  ;;  %v1134_v5 = vsel %vm2648_vm3, %v2576_v62, %v2628_v61 }
 0x114   : > { %v785_v12 = vadd.f32 %v1853_v46, %v784_v37  ;;  %v904_v36 = vmul.f32 %v1855_v55, %v903_v7  ;;  %vm1026_vm5 = vweird.f32 %v2603_v40  ;;  %v1033_v63 = vor.u32 1.1754944e-38, %v1032_v2  ;;  %vm908_vm9 = vmor %vm906_vm0, %vm907_vm4  ;;  %v528_v10 = vpop.f32.mrf.mxu3 }
 0x115   : > { %v1857_v13 = vpop.eup %1856  ;;  %vm2657_vm6 = vcmp.eq.f32.partialorder %v1135_v29, 8.507059e+37  ;;  %v1150_v56 = vand.u32 2147483647, %v2621_v35  ;;  %v2666_v15 = vadd.f32 %v2249_v25, %v544_v3  ;;  %v2669_v62 = vadd.f32 %v2249_v25, %v552_v4 }
 0x116   : > { %v560_v16 = vmul.f32 %v2244_v24, %v506_v59  ;;  %v789_v17 = vsel %vm788_vm7, %v1853_v46, %v785_v12  ;;  %v905_v30 = vadd.f32 %v1855_v55, %v904_v36  ;;  %v1022_v18 = vmul.f32 %v1857_v13, %v2603_v40  ;;  %v468_v46 = vpop.f32.mrf.mxu0 }
 0x117   : > { %vm2673_vm8 = vcmp.eq.f32.partialorder %v1030_v8, 8.507059e+37  ;;  %v1152_v6 = vand.u32 2147483648, %v2621_v35  ;;  %v794_v29 = vsel %vm2616_vm15, %v793_v58, %v789_v17  ;;  %vm1027_vm10 = vweird.f32 %v1857_v13 }
 0x118   : > { %v1539_v57 = vmul.f32 -1.442695, %v2666_v15  ;;  %v1547_v32 = vmul.f32 -1.442695, %v2669_v62  ;;  %v1859_v33 = vpop.eup %1858  ;;  %v1219_v31 = vmul.f32 %v794_v29, %v2487_v42  ;;  %v909_v22 = vsel %vm908_vm9, %v1855_v55, %v905_v30  ;;  %vm1028_vm12 = vmor %vm1026_vm5, %vm1027_vm10 }
 0x119   : > { %v1023_v34 = vsub.f32 1.0, %v1022_v18  ;;  %v2687_v39 = vadd.f32 %v2249_v25, %v560_v16  ;;  %v914_v48 = vsel %vm2631_vm1, %v913_v11, %v909_v22  ;;  %v1142_v45 = vmul.f32 %v1859_v33, %v2621_v35 }
 0x11a   : > { %vm1147_vm11 = vweird.f32 %v1859_v33  ;;  %1860 = vpow2.f32 %v1539_v57  ;;  %v1606_v26 = vpack.c.bf16 %v1219_v31, %v2606_v47  ;;  %v1227_v42 = vmul.f32 %v914_v48, %v2504_v23 }
 0x11b   : > { %v1024_v51 = vmul.f32 %v1857_v13, %v1023_v34  ;;  %1862 = vpow2.f32 %v1547_v32  ;;  %v1143_v53 = vsub.f32 1.0, %v1142_v45  ;;  %v1555_v54 = vmul.f32 -1.442695, %v2687_v39 }
 0x11c   : > { %v568_v55 = vmul.f32 %v2244_v24, %v526_v28  ;;  %v545_v20 = vmul.f32 %v2244_v24, %v468_v46  ;;  %1678 = vst [vmem:[%s2483_s7 + $0x8] sm:$0xff] %v1606_v26   ;;  %v1626_v58 = vpack.c.bf16 %v1227_v42, %v1226_v9  ;;  %v553_v59 = vmul.f32 %v2244_v24, %v488_v49 }
 0x11d   : > { %v1025_v41 = vadd.f32 %v1857_v13, %v1024_v51  ;;  %v561_v52 = vmul.f32 %v2244_v24, %v508_v19  ;;  %v1144_v23 = vmul.f32 %v1859_v33, %v1143_v53  ;;  %1864 = vpow2.f32 %v1555_v54  ;;  %v491_v19 = vpop.f32.mrf.mxu1 }
 0x11e   : > { %v2704_v47 = vadd.f32 %v2249_v25, %v568_v55  ;;  %v2707_v61 = vadd.f32 %v2249_v25, %v545_v20  ;;  %v1139_v44 = vsel %vm2657_vm6, %v2600_v38, %v1134_v5  ;;  %1682 = vst [vmem:[%s2483_s7 + $0x28] sm:$0xff] %v1626_v58   ;;  %vm1146_vm13 = vweird.f32 %v2621_v35  ;;  %v471_v22 = vpop.f32.mrf.mxu0 }
 0x11f   : > { %v1029_v21 = vsel %vm1028_vm12, %v1857_v13, %v1025_v41  ;;  %vm2714_vm14 = vcmp.eq.f32.partialorder %v1150_v56, 8.507059e+37  ;;  %v1145_v3 = vadd.f32 %v1859_v33, %v1144_v23  ;;  %v2722_v37 = vadd.f32 %v2249_v25, %v553_v59  ;;  %vm1148_vm15 = vmor %vm1146_vm13, %vm1147_vm11 }
 0x120   : > { %v1861_v40 = vpop.eup %1860  ;;  %v1034_v2 = vsel %vm2673_vm8, %v1033_v63, %v1029_v21  ;;  %v1563_v4 = vmul.f32 -1.442695, %v2704_v47  ;;  %v1153_v35 = vor.u32 1.1754944e-38, %v1152_v6  ;;  %v2729_v9 = vadd.f32 %v2249_v25, %v561_v52 }
 0x121   : > { %v1863_v7 = vpop.eup %1862  ;;  %v1235_v38 = vmul.f32 %v1034_v2, %v2507_v27  ;;  %v2726_v8 = vadd.f32 1.0, %v1861_v40  ;;  %v1149_v11 = vsel %vm1148_vm15, %v1859_v33, %v1145_v3  ;;  %v1540_v12 = vmul.f32 -1.442695, %v2707_v61  ;;  %v2914_v2 = vld [vmem:[%s3196_s2] ss:$0 sm:$0xff] }
 0x122   : > { %v2731_v5 = vadd.f32 1.0, %v1863_v7  ;;  %1866 = vpow2.f32 %v1563_v4  ;;  %v1242_v36 = vmul.f32 %v1139_v44, %v2476_v0  ;;  %v1154_v63 = vsel %vm2714_vm14, %v1153_v35, %v1149_v11 }
 0x123   : > { %v1646_v27 = vpack.c.bf16 %v1235_v38, %v2642_v50  ;;  %1868 = vrcp.f32 %v2726_v8  ;;  %v1865_v13 = vpop.eup %1864  ;;  %v1243_v14 = vmul.f32 %v1154_v63, %v2524_v43  ;;  %v1548_v56 = vmul.f32 -1.442695, %v2722_v37 }
 0x124   : > { %1870 = vrcp.f32 %v2731_v5  ;;  %v569_v16 = vmul.f32 %v2244_v24, %v528_v10  ;;  %v2744_v17 = vadd.f32 1.0, %v1865_v13  ;;  %v1556_v50 = vmul.f32 -1.442695, %v2729_v9 }
 0x125   : > { %1686 = vst [vmem:[%s2483_s7 + $0x48] sm:$0xff] %v1646_v27   ;;  %v1666_v0 = vpack.c.bf16 %v1243_v14, %v1242_v36  ;;  %1872 = vpow2.f32 %v1540_v12  ;;  %v807_v18 = vand.u32 2147483648, %v2726_v8  ;;  %v927_v6 = vand.u32 2147483648, %v2731_v5 }
 0x126   : > { %1874 = vrcp.f32 %v2744_v17  ;;  %v2751_v43 = vadd.f32 %v2249_v25, %v569_v16  ;;  %vm801_vm0 = vweird.f32 %v2726_v8  ;;  %v805_v32 = vand.u32 2147483647, %v2726_v8 }
 0x127   : > { %1690 = vst [vmem:[%s2483_s7 + $0x68] sm:$0xff] %v1666_v0   ;;  %1876 = vpow2.f32 %v1548_v56  ;;  %vm921_vm1 = vweird.f32 %v2731_v5  ;;  %v925_v31 = vand.u32 2147483647, %v2731_v5  ;;  %v808_v48 = vor.u32 1.1754944e-38, %v807_v18 }
 0x128   : > { %v1867_v30 = vpop.eup %1866  ;;  %1878 = vpow2.f32 %v1556_v50  ;;  %v1045_v45 = vand.u32 2147483647, %v2744_v17  ;;  %v1564_v49 = vmul.f32 -1.442695, %v2751_v43  ;;  %v928_v51 = vor.u32 1.1754944e-38, %v927_v6 }
 0x129   : > { %v2753_v60 = vpop.eup %1868  ;;  %v2756_v28 = vadd.f32 1.0, %v1867_v30  ;;  %vm1041_vm2 = vweird.f32 %v2744_v17  ;;  %vm2775_vm3 = vcmp.eq.f32.partialorder %v805_v32, 8.507059e+37  ;;  %v1047_v41 = vand.u32 2147483648, %v2744_v17 }
 0x12a   : > { %v2758_v29 = vpop.eup %1870  ;;  %v797_v57 = vmul.f32 %v2753_v60, %v2726_v8  ;;  %v546_v59 = vmul.f32 %v2244_v24, %v471_v22  ;;  %vm802_vm4 = vweird.f32 %v2753_v60  ;;  %vm2784_vm5 = vcmp.eq.f32.partialorder %v925_v31, 8.507059e+37  ;;  %v2927_v8 = vld [vmem:[%s3197_s3] ss:$0 sm:$0xff] }
 0x12b   : > { %v917_v33 = vmul.f32 %v2758_v29, %v2731_v5  ;;  %1880 = vrcp.f32 %v2756_v28  ;;  %v1873_v34 = vpop.eup %1872  ;;  %v554_v44 = vmul.f32 %v2244_v24, %v491_v19  ;;  %vm2791_vm6 = vcmp.eq.f32.partialorder %v1045_v45, 8.507059e+37  ;;  %vm2811_vm9 = vmor %vm801_vm0, %vm802_vm4 }
 0x12c   : > { %v798_v46 = vsub.f32 1.0, %v797_v57  ;;  %v1875_v26 = vpop.eup %1874  ;;  %v2772_v53 = vadd.f32 1.0, %v1873_v34  ;;  %vm922_vm7 = vweird.f32 %v2758_v29  ;;  %v1167_v7 = vand.u32 2147483648, %v2756_v28 }
 0x12d   : > { %v918_v42 = vsub.f32 1.0, %v917_v33  ;;  %v1877_v54 = vpop.eup %1876  ;;  %v1037_v58 = vmul.f32 %v1875_v26, %v2744_v17  ;;  %vm1042_vm8 = vweird.f32 %v1875_v26  ;;  %v2805_v10 = vadd.f32 %v2249_v25, %v546_v59  ;;  %vm2826_vm10 = vmor %vm921_vm1, %vm922_vm7 }
 0x12e   : > { %v799_v55 = vmul.f32 %v2753_v60, %v798_v46  ;;  %1882 = vrcp.f32 %v2772_v53  ;;  %v1879_v21 = vpop.eup %1878  ;;  %v2800_v38 = vadd.f32 1.0, %v1877_v54  ;;  %v1048_v12 = vor.u32 1.1754944e-38, %v1047_v41  ;;  %vm2837_vm11 = vmor %vm1041_vm2, %vm1042_vm8  ;;  %v511_v41 = vpop.f32.mrf.mxu2 }
 0x12f   : > { %v919_v52 = vmul.f32 %v2758_v29, %v918_v42  ;;  %v1038_v40 = vsub.f32 1.0, %v1037_v58  ;;  %1884 = vpow2.f32 %v1564_v49  ;;  %v1165_v36 = vand.u32 2147483647, %v2756_v28 }
 0x130   : > { %v800_v1 = vadd.f32 %v2753_v60, %v799_v55  ;;  %v2816_v27 = vadd.f32 1.0, %v1879_v21  ;;  %v2819_v63 = vadd.f32 %v2249_v25, %v554_v44  ;;  %v820_v16 = vand.u32 2147483647, %v2772_v53 }
 0x131   : > { %v2795_v3 = vpop.eup %1880  ;;  %v920_v4 = vadd.f32 %v2758_v29, %v919_v52  ;;  %v1039_v24 = vmul.f32 %v1875_v26, %v1038_v40  ;;  %vm1161_vm12 = vweird.f32 %v2756_v28  ;;  %v2842_v5 = vor.u32 1.1754944e-38, %v1167_v7 }
 0x132   : > { %v1157_v35 = vmul.f32 %v2795_v3, %v2756_v28  ;;  %v804_v13 = vsel %vm2811_vm9, %v2753_v60, %v800_v1  ;;  %v822_v30 = vand.u32 2147483648, %v2772_v53  ;;  %1886 = vrcp.f32 %v2800_v38 }
 0x133   : > { %v1040_v14 = vadd.f32 %v1875_v26, %v1039_v24  ;;  %v924_v25 = vsel %vm2826_vm10, %v2758_v29, %v920_v4  ;;  %vm816_vm13 = vweird.f32 %v2772_v53  ;;  %v1541_v17 = vmul.f32 -1.442695, %v2805_v10 }
 0x134   : > { %v1158_v56 = vsub.f32 1.0, %v1157_v35  ;;  %v1883_v0 = vpop.eup %1882  ;;  %v809_v29 = vsel %vm2775_vm3, %v808_v48, %v804_v13  ;;  %vm1162_vm14 = vweird.f32 %v2795_v3  ;;  %1888 = vrcp.f32 %v2816_v27 }
 0x135   : > { %v1885_v18 = vpop.eup %1884  ;;  %v1044_v60 = vsel %vm2837_vm11, %v1875_v26, %v1040_v14  ;;  %v812_v6 = vmul.f32 %v1883_v0, %v2772_v53  ;;  %v929_v32 = vsel %vm2784_vm5, %v928_v51, %v924_v25  ;;  %vm2858_vm15 = vcmp.eq.f32.partialorder %v820_v16, 8.507059e+37  ;;  %vm2895_vm5 = vmor %vm1161_vm12, %vm1162_vm14  ;;  %v473_v25 = vpop.f32.mrf.mxu0 }
 0x136   : > { %v1159_v57 = vmul.f32 %v2795_v3, %v1158_v56  ;;  %v940_v22 = vand.u32 2147483647, %v2800_v38  ;;  %v1049_v34 = vsel %vm2791_vm6, %v1048_v12, %v1044_v60  ;;  %vm817_vm0 = vweird.f32 %v1883_v0  ;;  %v531_v12 = vpop.f32.mrf.mxu3 }
 0x137   : > { %v813_v33 = vsub.f32 1.0, %v812_v6  ;;  %v823_v46 = vor.u32 1.1754944e-38, %v822_v30  ;;  %v2865_v48 = vadd.f32 1.0, %v1885_v18  ;;  %v942_v49 = vand.u32 2147483648, %v2800_v38  ;;  %vm818_vm3 = vmor %vm816_vm13, %vm817_vm0 }
 0x138   : > { %1890 = vpow2.f32 %v1541_v17  ;;  %v1549_v19 = vmul.f32 -1.442695, %v2819_v63  ;;  %v1887_v26 = vpop.eup %1886  ;;  %v1220_v42 = vmul.f32 %v809_v29, %v2666_v15  ;;  %v2871_v51 = vmul.f32 %v929_v32, %v2669_v62 }
 0x139   : > { %v814_v45 = vmul.f32 %v1883_v0, %v813_v33  ;;  %v2874_v54 = vadd.f32 %v2795_v3, %v1159_v57  ;;  %1892 = vrcp.f32 %v2865_v48  ;;  %v932_v20 = vmul.f32 %v1887_v26, %v2800_v38 }
 0x13a   : > { %vm936_vm1 = vweird.f32 %v2800_v38  ;;  %vm2879_vm2 = vcmp.eq.f32.partialorder %v940_v22, 8.507059e+37  ;;  %v1889_v59 = vpop.eup %1888  ;;  %v2884_v15 = vmul.f32 %v1049_v34, %v2687_v39  ;;  %vm1056_vm4 = vweird.f32 %v2816_v27  ;;  %v493_v22 = vpop.f32.mrf.mxu1 }
 0x13b   : > { %v815_v55 = vadd.f32 %v1883_v0, %v814_v45  ;;  %v1060_v62 = vand.u32 2147483647, %v2816_v27  ;;  %1894 = vpow2.f32 %v1549_v19  ;;  %vm2899_vm6 = vcmp.eq.f32.partialorder %v1165_v36, 8.507059e+37 }
 0x13c   : > { %v933_v53 = vsub.f32 1.0, %v932_v20  ;;  %v943_v44 = vor.u32 1.1754944e-38, %v942_v49  ;;  %v1052_v21 = vmul.f32 %v1889_v59, %v2816_v27  ;;  %v1164_v1 = vsel %vm2895_vm5, %v2795_v3, %v2874_v54  ;;  %v513_v20 = vpop.f32.mrf.mxu2 }
 0x13d   : > { %v819_v23 = vsel %vm818_vm3, %v1883_v0, %v815_v55  ;;  %v1062_v40 = vand.u32 2147483648, %v2816_v27  ;;  %v562_v4 = vmul.f32 %v2914_v2, %v511_v41  ;;  %vm937_vm7 = vweird.f32 %v1887_v26 }
 0x13e   : > { %v824_v28 = vsel %vm2858_vm15, %v823_v46, %v819_v23  ;;  %v1891_v7 = vpop.eup %1890  ;;  %v934_v35 = vmul.f32 %v1887_v26, %v933_v53  ;;  %v1053_v11 = vsub.f32 1.0, %v1052_v21  ;;  %vm1057_vm8 = vweird.f32 %v1889_v59  ;;  %vm938_vm10 = vmor %vm936_vm1, %vm937_vm7  ;;  %v533_v41 = vpop.f32.mrf.mxu3 }
 0x13f   : > { %v1221_v24 = vmul.f32 %v824_v28, %v2707_v61  ;;  %v1893_v3 = vpop.eup %1892  ;;  %vm2918_vm9 = vcmp.eq.f32.partialorder %v1060_v62, 8.507059e+37  ;;  %v2922_v13 = vadd.f32 1.0, %v1891_v7  ;;  %v2930_v61 = vadd.f32 %v2927_v8, %v562_v4  ;;  %vm1058_vm11 = vmor %vm1056_vm4, %vm1057_vm8 }
 0x140   : > { %v935_v56 = vadd.f32 %v1887_v26, %v934_v35  ;;  %v1054_v16 = vmul.f32 %v1889_v59, %v1053_v11  ;;  %v1172_v0 = vmul.f32 %v1893_v3, %v2865_v48  ;;  %v1063_v30 = vor.u32 1.1754944e-38, %v1062_v40 }
 0x141   : > { %v1611_v14 = vpack.c.bf16 %v1221_v24, %v1220_v42  ;;  %v1895_v50 = vpop.eup %1894  ;;  %v1180_v18 = vand.u32 2147483647, %v2865_v48  ;;  %v1182_v60 = vand.u32 2147483648, %v2865_v48  ;;  %1896 = vrcp.f32 %v2922_v13 }
 0x142   : > { %v939_v6 = vsel %vm938_vm10, %v1887_v26, %v935_v56  ;;  %v1055_v17 = vadd.f32 %v1889_v59, %v1054_v16  ;;  %v1173_v29 = vsub.f32 1.0, %v1172_v0  ;;  %v570_v57 = vmul.f32 %v2914_v2, %v531_v12 }
 0x143   : > { %1679 = vst [vmem:[%s2483_s7 + $0x10] sm:$0xff] %v1611_v14   ;;  %v944_v32 = vsel %vm2879_vm2, %v943_v44, %v939_v6  ;;  %v2946_v38 = vadd.f32 1.0, %v1895_v50  ;;  %v1557_v33 = vmul.f32 -1.442695, %v2930_v61  ;;  %v547_v31 = vmul.f32 %v2914_v2, %v473_v25 }
 0x144   : > { %v1229_v34 = vmul.f32 %v944_v32, %v2722_v37  ;;  %v1059_v46 = vsel %vm1058_vm11, %v1889_v59, %v1055_v17  ;;  %v1174_v45 = vmul.f32 %v1893_v3, %v1173_v29  ;;  %vm1177_vm12 = vweird.f32 %v1893_v3 }
 0x145   : > { %v1169_v49 = vsel %vm2899_vm6, %v2842_v5, %v1164_v1  ;;  %v1064_v27 = vsel %vm2918_vm9, %v1063_v30, %v1059_v46  ;;  %vm1176_vm13 = vweird.f32 %v2865_v48  ;;  %1898 = vrcp.f32 %v2946_v38 }
 0x146   : > { %v1631_v19 = vpack.c.bf16 %v1229_v34, %v2871_v51  ;;  %v1237_v26 = vmul.f32 %v1064_v27, %v2729_v9  ;;  %v1175_v37 = vadd.f32 %v1893_v3, %v1174_v45  ;;  %v555_v42 = vmul.f32 %v2914_v2, %v493_v22  ;;  %vm1178_vm14 = vmor %vm1176_vm13, %vm1177_vm12 }
 0x147   : > { %v2961_v54 = vpop.eup %1896  ;;  %v1183_v55 = vor.u32 1.1754944e-38, %v1182_v60  ;;  %1900 = vpow2.f32 %v1557_v33  ;;  %v2964_v5 = vadd.f32 %v2927_v8, %v570_v57  ;;  %v2967_v48 = vadd.f32 %v2927_v8, %v547_v31 }
 0x148   : > { %1683 = vst [vmem:[%s2483_s7 + $0x30] sm:$0xff] %v1631_v19   ;;  %v1651_v51 = vpack.c.bf16 %v1237_v26, %v2884_v15  ;;  %v1179_v9 = vsel %vm1178_vm14, %v1893_v3, %v1175_v37  ;;  %vm1181_vm15 = vcmp.eq.f32.partialorder %v1180_v18, 8.507059e+37  ;;  %v827_v58 = vmul.f32 %v2961_v54, %v2922_v13 }
 0x149   : > { %v1244_v59 = vmul.f32 %v1169_v49, %v2704_v47  ;;  %v1184_v62 = vsel %vm1181_vm15, %v1183_v55, %v1179_v9  ;;  %v1565_v52 = vmul.f32 -1.442695, %v2964_v5  ;;  %v1542_v39 = vmul.f32 -1.442695, %v2967_v48 }
 0x14a   : > { %1687 = vst [vmem:[%s2483_s7 + $0x50] sm:$0xff] %v1651_v51   ;;  %v1245_v23 = vmul.f32 %v1184_v62, %v2751_v43  ;;  %v828_v53 = vsub.f32 1.0, %v827_v58  ;;  %v2979_v15 = vadd.f32 %v2927_v8, %v555_v42  ;;  %v563_v44 = vmul.f32 %v2914_v2, %v513_v20 }
 0x14b   : > { %v2982_v21 = vpop.eup %1898  ;;  %1902 = vpow2.f32 %v1565_v52  ;;  %v571_v47 = vmul.f32 %v2914_v2, %v533_v41  ;;  %vm831_vm0 = vweird.f32 %v2922_v13  ;;  %vm832_vm1 = vweird.f32 %v2961_v54 }
 0x14c   : > { %v1671_v1 = vpack.c.bf16 %v1245_v23, %v1244_v59  ;;  %v829_v28 = vmul.f32 %v2961_v54, %v828_v53  ;;  %v947_v40 = vmul.f32 %v2982_v21, %v2946_v38  ;;  %1904 = vpow2.f32 %v1542_v39  ;;  %vm3011_vm2 = vmor %vm831_vm0, %vm832_vm1 }
 0x14d   : > { %v1901_v4 = vpop.eup %1900  ;;  %v1550_v43 = vmul.f32 -1.442695, %v2979_v15  ;;  %v2990_v7 = vadd.f32 %v2927_v8, %v563_v44  ;;  %v2993_v24 = vadd.f32 %v2927_v8, %v571_v47  ;;  %v837_v14 = vand.u32 2147483648, %v2922_v13 }
 0x14e   : > { %1691 = vst [vmem:[%s2483_s7 + $0x70] sm:$0xff] %v1671_v1   ;;  %v948_v35 = vsub.f32 1.0, %v947_v40  ;;  %v2996_v11 = vadd.f32 1.0, %v1901_v4  ;;  %v830_v3 = vadd.f32 %v2961_v54, %v829_v28  ;;  %v835_v56 = vand.u32 2147483647, %v2922_v13 }
 0x14f   : > { %1906 = vpow2.f32 %v1550_v43  ;;  %v1558_v2 = vmul.f32 -1.442695, %v2990_v7  ;;  %v1566_v12 = vmul.f32 -1.442695, %v2993_v24  ;;  %vm951_vm3 = vweird.f32 %v2946_v38 }
 0x150   : > { %v949_v36 = vmul.f32 %v2982_v21, %v948_v35  ;;  %1908 = vrcp.f32 %v2996_v11  ;;  %v834_v50 = vsel %vm3011_vm2, %v2961_v54, %v830_v3  ;;  %vm952_vm4 = vweird.f32 %v2982_v21 }
 0x151   : > { %v1903_v8 = vpop.eup %1902  ;;  %1910 = vpow2.f32 %v1558_v2  ;;  %v838_v60 = vor.u32 1.1754944e-38, %v837_v14  ;;  %v955_v13 = vand.u32 2147483647, %v2946_v38  ;;  %v957_v6 = vand.u32 2147483648, %v2946_v38  ;;  %vm3033_vm6 = vmor %vm951_vm3, %vm952_vm4 }
 0x152   : > { %v3007_v16 = vadd.f32 1.0, %v1903_v8  ;;  %1912 = vpow2.f32 %v1566_v12  ;;  %v1905_v0 = vpop.eup %1904  ;;  %v950_v30 = vadd.f32 %v2982_v21, %v949_v36  ;;  %vm836_vm5 = vcmp.eq.f32.partialorder %v835_v56, 8.507059e+37 }
 0x153   : > { %v3024_v17 = vadd.f32 1.0, %v1905_v0  ;;  %v1077_v57 = vand.u32 2147483648, %v2996_v11  ;;  %v839_v31 = vsel %vm836_vm5, %v838_v60, %v834_v50  ;;  %vm956_vm7 = vcmp.eq.f32.partialorder %v955_v13, 8.507059e+37 }
 0x154   : > { %1914 = vrcp.f32 %v3007_v16  ;;  %v954_v45 = vsel %vm3033_vm6, %v2982_v21, %v950_v30  ;;  %v958_v49 = vor.u32 1.1754944e-38, %v957_v6  ;;  %v1075_v38 = vand.u32 2147483647, %v2996_v11 }
 0x155   : > { %v1907_v18 = vpop.eup %1906  ;;  %1916 = vrcp.f32 %v3024_v17  ;;  %v3048_v26 = vmul.f32 %v839_v31, %v2805_v10  ;;  %vm1071_vm8 = vweird.f32 %v2996_v11  ;;  %v3051_v37 = vor.u32 1.1754944e-38, %v1077_v57 }
 0x156   : > { %v3026_v29 = vpop.eup %1908  ;;  %v3029_v32 = vadd.f32 1.0, %v1907_v18  ;;  %v959_v55 = vsel %vm956_vm7, %v958_v49, %v954_v45  ;;  %vm1191_vm9 = vweird.f32 %v3007_v16  ;;  %v1197_v51 = vand.u32 2147483648, %v3007_v16 }
 0x157   : > { %v1911_v33 = vpop.eup %1910  ;;  %v1067_v34 = vmul.f32 %v3026_v29, %v2996_v11  ;;  %v1195_v9 = vand.u32 2147483647, %v3007_v16  ;;  %v850_v10 = vand.u32 2147483647, %v3024_v17  ;;  %v852_v58 = vand.u32 2147483648, %v3024_v17 }
 0x158   : > { %v1913_v46 = vpop.eup %1912  ;;  %1918 = vrcp.f32 %v3029_v32  ;;  %v3053_v42 = vadd.f32 1.0, %v1911_v33  ;;  %v970_v52 = vand.u32 2147483647, %v3029_v32  ;;  %v3069_v23 = vmul.f32 %v959_v55, %v2819_v63 }
 0x159   : > { %v1068_v27 = vsub.f32 1.0, %v1067_v34  ;;  %v3055_v54 = vadd.f32 1.0, %v1913_v46  ;;  %vm1072_vm10 = vweird.f32 %v3026_v29  ;;  %v972_v44 = vand.u32 2147483648, %v3029_v32 }
 0x15a   : > { %v3045_v19 = vpop.eup %1914  ;;  %1920 = vrcp.f32 %v3053_v42  ;;  %v1198_v47 = vor.u32 1.1754944e-38, %v1197_v51  ;;  %vm846_vm11 = vweird.f32 %v3024_v17  ;;  %vm3077_vm12 = vcmp.eq.f32.partialorder %v850_v10, 8.507059e+37  ;;  %vm3101_vm3 = vmor %vm1071_vm8, %vm1072_vm10 }
 0x15b   : > { %v1187_v20 = vmul.f32 %v3045_v19, %v3007_v16  ;;  %v1917_v41 = vpop.eup %1916  ;;  %v1069_v59 = vmul.f32 %v3026_v29, %v1068_v27  ;;  %1922 = vrcp.f32 %v3055_v54  ;;  %v853_v63 = vor.u32 1.1754944e-38, %v852_v58 }
 0x15c   : > { %v842_v53 = vmul.f32 %v1917_v41, %v3024_v17  ;;  %vm966_vm13 = vweird.f32 %v3029_v32  ;;  %vm3083_vm14 = vcmp.eq.f32.partialorder %v1075_v38, 8.507059e+37  ;;  %vm1192_vm15 = vweird.f32 %v3045_v19 }
 0x15d   : > { %v1188_v62 = vsub.f32 1.0, %v1187_v20  ;;  %v1070_v4 = vadd.f32 %v3026_v29, %v1069_v59  ;;  %vm3088_vm0 = vcmp.eq.f32.partialorder %v970_v52, 8.507059e+37  ;;  %vm3093_vm1 = vcmp.eq.f32.partialorder %v1195_v9, 8.507059e+37  ;;  %vm3111_vm6 = vmor %vm1191_vm9, %vm1192_vm15 }
 0x15e   : > { %v1919_v39 = vpop.eup %1918  ;;  %v843_v28 = vsub.f32 1.0, %v842_v53  ;;  %vm847_vm2 = vweird.f32 %v1917_v41  ;;  %v973_v14 = vor.u32 1.1754944e-38, %v972_v44  ;;  %vm1086_vm5 = vweird.f32 %v3053_v42 }
 0x15f   : > { %v1189_v21 = vmul.f32 %v3045_v19, %v1188_v62  ;;  %v962_v1 = vmul.f32 %v1919_v39, %v3029_v32  ;;  %vm967_vm4 = vweird.f32 %v1919_v39  ;;  %v1090_v18 = vand.u32 2147483647, %v3053_v42  ;;  %vm848_vm7 = vmor %vm846_vm11, %vm847_vm2 }
 0x160   : > { %v1921_v12 = vpop.eup %1920  ;;  %v844_v8 = vmul.f32 %v1917_v41, %v843_v28  ;;  %v1092_v60 = vand.u32 2147483648, %v3053_v42  ;;  %v1074_v6 = vsel %vm3101_vm3, %v3026_v29, %v1070_v4  ;;  %v1210_v33 = vand.u32 2147483647, %v3055_v54  ;;  %vm968_vm8 = vmor %vm966_vm13, %vm967_vm4 }
 0x161   : > { %v963_v35 = vsub.f32 1.0, %v962_v1  ;;  %v1190_v3 = vadd.f32 %v3045_v19, %v1189_v21  ;;  %v1923_v56 = vpop.eup %1922  ;;  %v1082_v50 = vmul.f32 %v1921_v12, %v3053_v42  ;;  %v1212_v46 = vand.u32 2147483648, %v3055_v54 }
 0x162   : > { %v845_v11 = vadd.f32 %v1917_v41, %v844_v8  ;;  %v1202_v13 = vmul.f32 %v1923_v56, %v3055_v54  ;;  %vm1087_vm9 = vweird.f32 %v1921_v12  ;;  %vm1207_vm10 = vweird.f32 %v1923_v56 }
 0x163   : > { %v964_v25 = vmul.f32 %v1919_v39, %v963_v35  ;;  %v1083_v57 = vsub.f32 1.0, %v1082_v50  ;;  %v1194_v31 = vsel %vm3111_vm6, %v3045_v19, %v1190_v3  ;;  %vm1091_vm11 = vcmp.eq.f32.partialorder %v1090_v18, 8.507059e+37 }
 0x164   : > { %v849_v22 = vsel %vm848_vm7, %v1917_v41, %v845_v11  ;;  %v1203_v34 = vsub.f32 1.0, %v1202_v13  ;;  %vm1206_vm13 = vweird.f32 %v3055_v54  ;;  %v1199_v54 = vsel %vm3093_vm1, %v1198_v47, %v1194_v31 }
 0x165   : > { %v965_v16 = vadd.f32 %v1919_v39, %v964_v25  ;;  %v854_v17 = vsel %vm3077_vm12, %v853_v63, %v849_v22  ;;  %v1084_v45 = vmul.f32 %v1921_v12, %v1083_v57  ;;  %vm1088_vm12 = vmor %vm1086_vm5, %vm1087_vm9  ;;  %v1213_v10 = vor.u32 1.1754944e-38, %v1212_v46 }
 0x166   : > { %v1223_v49 = vmul.f32 %v854_v17, %v2967_v48  ;;  %v1204_v38 = vmul.f32 %v1923_v56, %v1203_v34  ;;  %v1079_v48 = vsel %vm3083_vm14, %v3051_v37, %v1074_v6  ;;  %vm1208_vm15 = vmor %vm1206_vm13, %vm1207_vm10  ;;  %vm1211_vm14 = vcmp.eq.f32.partialorder %v1210_v33, 8.507059e+37 }
 0x167   : > { %v969_v29 = vsel %vm968_vm8, %v1919_v39, %v965_v16  ;;  %v1085_v19 = vadd.f32 %v1921_v12, %v1084_v45  ;;  %v1246_v59 = vmul.f32 %v1199_v54, %v2964_v5 }
 0x168   : > { %v974_v27 = vsel %vm3088_vm0, %v973_v14, %v969_v29  ;;  %v1616_v55 = vpack.c.bf16 %v1223_v49, %v3048_v26  ;;  %v1205_v20 = vadd.f32 %v1923_v56, %v1204_v38  ;;  %v1238_v26 = vmul.f32 %v1079_v48, %v2930_v61 }
 0x169   : > { %v1231_v32 = vmul.f32 %v974_v27, %v2979_v15  ;;  %v1093_v15 = vor.u32 1.1754944e-38, %v1092_v60  ;;  %v1089_v9 = vsel %vm1088_vm12, %v1921_v12, %v1085_v19 }
 0x16a   : > { %1680 = vst [vmem:[%s2483_s7 + $0x18] sm:$0xff] %v1616_v55   ;;  %v1209_v37 = vsel %vm1208_vm15, %v1923_v56, %v1205_v20 }
 0x16b   : > { %v1636_v51 = vpack.c.bf16 %v1231_v32, %v3069_v23  ;;  %v1094_v58 = vsel %vm1091_vm11, %v1093_v15, %v1089_v9  ;;  %v1214_v41 = vsel %vm1211_vm14, %v1213_v10, %v1209_v37 }
 0x16c   : > { %v1239_v42 = vmul.f32 %v1094_v58, %v2990_v7  ;;  %v1247_v62 = vmul.f32 %v1214_v41, %v2993_v24 }
 0x16d   : > { %1684 = vst [vmem:[%s2483_s7 + $0x38] sm:$0xff] %v1636_v51  }
 0x16e   : > { %v1656_v52 = vpack.c.bf16 %v1239_v42, %v1238_v26  ;;  %v1676_v39 = vpack.c.bf16 %v1247_v62, %v1246_v59 }
 0x170   : > { %1688 = vst [vmem:[%s2483_s7 + $0x58] sm:$0xff] %v1656_v52  }
 0x171   : > { %1692 = vst [vmem:[%s2483_s7 + $0x78] sm:$0xff] %v1676_v39  }
 0x172   : > { %2013 = shalt.err (!%p2010_p0)
}
 0x173   : > { %s2077_s10 = smov 64   ;;  %s2078_s7 = smov 4  }
 0x174   : > { %1723 = dma.vmem_to_hbm [thread:$0]  (%p2186_p5), %s1328_s6, 2048, %s1330_s24, %s1313_s13, %s2077_s10, %s2077_s10, %s2078_s7  }
 0x175 PF: > { %s1344_s9 = sand.u32 1, %s2052_s15   ;;  %p1734_p3 = pnand %p1431_p11, %p2153_p6 }
 0x176   : > { %s1345_s14 = scalar_lea.sflag [#allocation4], %s1344_s9 }
 0x177   : > { %p1735_p7 = pneg %p1734_p3 }
 0x179   : > { %2047 = dma.done.wait (%p1735_p7), %s1345_s14, 2048  }
 0x17a   : > { %2049 = vsyncadd (%p1735_p7), %s1345_s14, 4294965248  ;;  %s21_s20 = sadd.s32 1, %s2072_s20   ;;  %s3294_s12 = sld [smem:[#allocation11_spill]] }
 0x17b   : > { %p18_p9 = scmp.ge.s32.totalorder %s21_s20, 4   ;;  %s3295_s15 = smov %s2056_s16 }
 0x17c   : > { %s3296_s16 = smov %s2060_s17  ;;  %s3297_s17 = smov %s2195_s22 }
 0x17d   : > { %s3298_s18 = smov %s2068_s19  ;;  %20 = sbr.rel (!%p18_p9) target bundleno = 9 (0x9), region = 85 }
 0x180   : > { %s3299_s19 = smov %s3294_s12 }
 0x182   :  { %1351 = vsyncpa [#allocation3], 1 }
 0x183   :  { %1353 = vsyncpa [#allocation3 + $0x1], 1 }
 0x184   :  { %1354 = vsyncpa [#allocation6], 1 }
 0x185   :  { %1355 = vsyncpa [#allocation4], 1 }
 0x186   :  { %1357 = vsyncpa [#allocation4 + $0x1], 1 }

</bundles_post_ra>
